<compile_context>
chip_gen: v7x
topology: tpu7x:2x2x1
jax: 0.10.0
libtpu: 0.0.40
codegen_flags: <defaults>
</compile_context>

<pallas_src>
import functools

import jax
import jax.numpy as jnp
from jax.experimental import pallas as pl
from jax.experimental.pallas import tpu as pltpu

# Conservative budget for (input block + output block), double-buffered by the pipeline.
_VMEM_BUDGET_BYTES = 8 * 1024 * 1024


def _pad_kernel(x_ref, o_ref, *, c_in, c_out):
    # x_ref: (NB, C_in, H*W)   o_ref: (NB, C_out, H*W)   (H*W on the lane axis -> dense stores)
    o_ref[:, :c_in, :] = x_ref[...]
    if c_out > c_in:
        nb, _, hw = o_ref.shape
        o_ref[:, c_in:, :] = jnp.zeros((nb, c_out - c_in, hw), dtype=o_ref.dtype)


def _pool_pad_kernel(x_ref, o_ref, *, c_in, c_out):
    # x_ref: (NB, C_in, H, W)   o_ref: (NB, C_out, Ho, Wo)
    nb, c, h, w = x_ref.shape
    _, _, ho, wo = o_ref.shape

    x = x_ref[...]
    if (h, w) != (2 * ho, 2 * wo):
        # nn.MaxPool2d(2, 2) floors odd spatial dims -> drop the last row/col.
        x = x[:, :, : 2 * ho, : 2 * wo]

    x3 = x.reshape(nb * c, 2 * ho, 2 * wo)                      # merge leading dims (free)
    # Pool H: split the sublane dim into (ho, 2) and max over the pair; lane dim untouched.
    xh = jnp.max(x3.reshape(nb * c, ho, 2, 2 * wo), axis=2)     # (NB*C, Ho, 2*Wo)
    # Swap minor dims (XLU transpose) so W sits on sublanes, then pool W the same way.
    xt = jnp.swapaxes(xh, 1, 2)                                 # (NB*C, 2*Wo, Ho)
    xw = jnp.max(xt.reshape(nb * c, wo, 2, ho), axis=2)         # (NB*C, Wo, Ho)
    pooled = jnp.swapaxes(xw, 1, 2).reshape(nb, c, ho, wo)      # (NB, C_in, Ho, Wo)

    # Zero-pad channels via slice stores (no concatenate temporaries).
    o_ref[:, :c_in, :, :] = pooled
    if c_out > c_in:
        o_ref[:, c_in:, :, :] = jnp.zeros((nb, c_out - c_in, ho, wo), dtype=o_ref.dtype)


def _batch_block(n, bytes_per_image):
    # Pick NB so that double-buffered (input + output) blocks stay under the VMEM budget.
    # TODO: tile H as well if a single image ever exceeds the budget (not needed here).
    nb = max(1, _VMEM_BUDGET_BYTES // max(1, 2 * bytes_per_image))
    return int(min(n, nb))


def identity_shortcut(x, inplane, outplane, stride):
    """x: (N, C_in, H, W) in NCHW (PyTorch convention). Returns NCHW output."""
    assert x.shape[1] == inplane
    assert outplane >= inplane
    if stride == 1 and inplane == outplane:
        return x  # pure identity branch of the PyTorch forward
    assert stride in (1, 2)

    n, _, h, w = x.shape
    itemsize = jnp.dtype(x.dtype).itemsize

    if stride == 1:
        # Channel zero-pad only. Flatten spatial dims (free reshape) so the lane axis
        # is H*W -> fully dense loads/stores, no relayout work in the kernel.
        hw = h * w
        x_flat = x.reshape(n, inplane, hw)
        nb = _batch_block(n, (inplane + outplane) * hw * itemsize)
        out_flat = pl.pallas_call(
            functools.partial(_pad_kernel, c_in=inplane, c_out=outplane),
            out_shape=jax.ShapeDtypeStruct((n, outplane, hw), x.dtype),
            grid=(pl.cdiv(n, nb),),
            in_specs=[pl.BlockSpec((nb, inplane, hw), lambda i: (i, 0, 0))],
            out_specs=pl.BlockSpec((nb, outplane, hw), lambda i: (i, 0, 0)),
            compiler_params=pltpu.CompilerParams(dimension_semantics=("parallel",)),
        )(x_flat)
        return out_flat.reshape(n, outplane, h, w)

    # stride == 2: 2x2 max pool (floor) + channel zero-pad, all directly in NCHW.
    ho, wo = h // 2, w // 2
    nb = _batch_block(n, (inplane * h * w + outplane * ho * wo) * itemsize)
    return pl.pallas_call(
        functools.partial(_pool_pad_kernel, c_in=inplane, c_out=outplane),
        out_shape=jax.ShapeDtypeStruct((n, outplane, ho, wo), x.dtype),
        grid=(pl.cdiv(n, nb),),
        in_specs=[pl.BlockSpec((nb, inplane, h, w), lambda i: (i, 0, 0, 0))],
        out_specs=pl.BlockSpec((nb, outplane, ho, wo), lambda i: (i, 0, 0, 0)),
        compiler_params=pltpu.CompilerParams(dimension_semantics=("parallel",)),
    )(x)


def _reference(x, inplane, outplane, stride):
    """Pure-JAX reference mirroring the PyTorch forward (NCHW)."""
    out = x
    if stride != 1 or inplane != outplane:
        out = jnp.pad(x, ((0, 0), (0, outplane - inplane), (0, 0), (0, 0)))
        if stride == 2:
            n, c, h, w = out.shape
            ho, wo = h // 2, w // 2
            out = out[:, :, : 2 * ho, : 2 * wo].reshape(n, c, ho, 2, wo, 2).max(axis=(3, 5))
    return out


if __name__ == "__main__":
    key = jax.random.PRNGKey(0)
    x = jax.random.normal(key, (2, 4, 16, 16), dtype=jnp.float32)

    # Downsampling shortcut: channels 4 -> 8, stride 2.
    out = jax.block_until_ready(identity_shortcut(x, 4, 8, 2))
    ref = _reference(x, 4, 8, 2)
    assert out.shape == ref.shape == (2, 8, 8, 8), out.shape
    assert jnp.array_equal(out, ref), "stride-2 shortcut mismatch vs reference"

    # Channel-pad-only shortcut: 4 -> 8, stride 1.
    out1 = jax.block_until_ready(identity_shortcut(x, 4, 8, 1))
    ref1 = _reference(x, 4, 8, 1)
    assert out1.shape == ref1.shape == (2, 8, 16, 16), out1.shape
    assert jnp.array_equal(out1, ref1), "pad-only shortcut mismatch vs reference"

    # Pure identity branch.
    out2 = jax.block_until_ready(identity_shortcut(x, 4, 4, 1))
    assert jnp.array_equal(out2, x), "identity branch mismatch"

    print("KERNEL_OK")
</pallas_src>

<mosaic_0001>
module attributes {stable_mosaic.version = 11 : i64} {
  func.func @_pool_pad_kernel(%arg0: i32, %arg1: memref<2x4x16x16xf32, #tpu.memory_space<vmem>>, %arg2: memref<2x8x8x8xf32, #tpu.memory_space<vmem>>) attributes {dimension_semantics = [#tpu.dimension_semantics<parallel>], iteration_bounds = array<i64: 1>, scalar_prefetch = 0 : i64, scratch_operands = 0 : i64, tpu.core_type = #tpu.core_type<tc>, window_params = [{transform_indices = @transform_0, window_bounds = array<i64: 2, 4, 16, 16>}, {transform_indices = @transform_1, window_bounds = array<i64: 2, 8, 8, 8>}]} {
    %c0 = arith.constant 0 : index
    %c0_0 = arith.constant 0 : index
    %c0_1 = arith.constant 0 : index
    %c0_2 = arith.constant 0 : index
    %0 = vector.load %arg1[%c0, %c0_0, %c0_1, %c0_2] : memref<2x4x16x16xf32, #tpu.memory_space<vmem>>, vector<2x4x16x16xf32>
    %1 = vector.shape_cast %0 : vector<2x4x16x16xf32> to vector<8x16x16xf32>
    %2 = vector.shape_cast %1 : vector<8x16x16xf32> to vector<8x8x2x16xf32>
    %cst = arith.constant dense<0xFF800000> : vector<8x8x16xf32>
    %3 = vector.multi_reduction <maximumf>, %2, %cst [2] : vector<8x8x2x16xf32> to vector<8x8x16xf32>
    %4 = tpu.transpose %3, [0, 2, 1] : vector<8x8x16xf32> -> vector<8x16x8xf32>
    %5 = vector.shape_cast %4 : vector<8x16x8xf32> to vector<8x8x2x8xf32>
    %cst_3 = arith.constant dense<0xFF800000> : vector<8x8x8xf32>
    %6 = vector.multi_reduction <maximumf>, %5, %cst_3 [2] : vector<8x8x2x8xf32> to vector<8x8x8xf32>
    %7 = tpu.transpose %6, [0, 2, 1] : vector<8x8x8xf32> -> vector<8x8x8xf32>
    %8 = vector.shape_cast %7 : vector<8x8x8xf32> to vector<2x4x8x8xf32>
    %c0_4 = arith.constant 0 : index
    %c0_5 = arith.constant 0 : index
    %c0_6 = arith.constant 0 : index
    %c0_7 = arith.constant 0 : index
    %9 = vector.load %arg2[%c0_4, %c0_5, %c0_6, %c0_7] : memref<2x8x8x8xf32, #tpu.memory_space<vmem>>, vector<2x4x8x8xf32>
    tpu.vector_store %arg2[%c0_4, %c0_5, %c0_6, %c0_7], %8 {strides = array<i32>} : memref<2x8x8x8xf32, #tpu.memory_space<vmem>>, vector<2x4x8x8xf32>,
    %cst_8 = arith.constant 0.000000e+00 : f32
    %10 = vector.broadcast %cst_8 : f32 to vector<2x4x8x8xf32>
    %c0_9 = arith.constant 0 : index
    %c4 = arith.constant 4 : index
    %c0_10 = arith.constant 0 : index
    %c0_11 = arith.constant 0 : index
    %11 = vector.load %arg2[%c0_9, %c4, %c0_10, %c0_11] : memref<2x8x8x8xf32, #tpu.memory_space<vmem>>, vector<2x4x8x8xf32>
    tpu.vector_store %arg2[%c0_9, %c4, %c0_10, %c0_11], %10 {strides = array<i32>} : memref<2x8x8x8xf32, #tpu.memory_space<vmem>>, vector<2x4x8x8xf32>,
    return
  }
  func.func @transform_0(%arg0: i32) -> (i32, i32, i32, i32) {
    %c0_i32 = arith.constant 0 : i32
    %c0_i32_0 = arith.constant 0 : i32
    %c0_i32_1 = arith.constant 0 : i32
    %c0_i32_2 = arith.constant 0 : i32
    return %arg0, %c0_i32, %c0_i32_0, %c0_i32_1 : i32, i32, i32, i32
  }
  func.func @transform_1(%arg0: i32) -> (i32, i32, i32, i32) {
    %c0_i32 = arith.constant 0 : i32
    %c0_i32_0 = arith.constant 0 : i32
    %c0_i32_1 = arith.constant 0 : i32
    %c0_i32_2 = arith.constant 0 : i32
    return %arg0, %c0_i32, %c0_i32_0, %c0_i32_1 : i32, i32, i32, i32
  }
}

</mosaic_0001>

<bundles_post_ra>
// kernel: tpu_custom_call.1
= control target key start
LH: loop header
LB: loop body
LE: loop exit
PB: predicated region body
PF: predicated region fallthrough
CT: control target
= control target key end

     0   :  { %6 = vsyncpa [#allocation3], 0  ;;  %s3006_s0 = inlined_call_operand.hbm [shape: f32[2,4,16,16], index: 0, kind: input, shape index: {}]   ;;  %s3007_s1 = inlined_call_operand.hbm [shape: f32[2,8,8,8], index: 1, kind: output, shape index: {}]  }
   0x1   :  { %7 = vsyncpa [#allocation4], 0  ;;  %s2521_s6 = smov [#allocation2]   ;;  %s2473_s10 = scalar_lea.hbm %s3006_s0, 2048 }
   0x2   :  { %s13_s7 = sshll.u32 %s2521_s6, 4  ;;  %p2474_p0 = scmp.ne.s32.totalorder %s3006_s0, %s2473_s10  ;;  %s14_s7 = int_to_ptr.vmem [resolvable:$true] %s13_s7 }
   0x3   :  { %p2477_p1 = scmp.lt.u32.totalorder %s2473_s10, %s3006_s0 }
   0x5   :  { %p2479_p2 = pnand %p2477_p1, %p2474_p0 }
   0x7   :  { %2482 = shalt.err (!%p2479_p2)
}
   0x8   :  { %s2483_s15 = scalar_lea.vmem %s14_s7, 2048  ;;  %p2488_p4 = scmp.lt.s32.totalorder %s14_s7, %s14_s7 }
   0x9   :  { %p2484_p3 = scmp.ne.s32.totalorder %s14_s7, %s2483_s15  ;;  %p2489_p5 = scmp.lt.s32.totalorder %s2483_s15, %s2483_s15 }
   0xb   :  { %p2490_p6 = por %p2489_p5, %p2488_p4 }
   0xd   :  { %p2491_p7 = pnand %p2490_p6, %p2484_p3 }
   0xf   :  { %2494 = shalt.err (!%p2491_p7)
}
  0x10   :  { %s2522_s16 = smov 128   ;;  %s2523_s17 = smov 8  }
  0x11   :  { %19 = dma.hbm_to_vmem [thread:$0]  %s3006_s0, 2048, %s14_s7, [#allocation3], %s2522_s16, %s2522_s16, %s2523_s17  }
  0x12   :  { %2517 = dma.done.wait [#allocation3], 2048  }
  0x13   :  { %2518 = vsyncadd [#allocation3], 4294965248  ;;  %v59_v0 = vlaneseq  ;;  %v2524_v1 = vmov 1983009808   ;;  %v27_v6 = vld [vmem:[#allocation2 + $0x20] sm:$0xff]  ;;  %v28_v7 = vld [vmem:[#allocation2 + $0x28] sm:$0xff] }
  0x14   :  { %v57_v2 = vunpack.c.l.s4 %v2524_v1  ;;  %vm391_vm0 = vcmask 123904   ;;  %v23_v8 = vld [vmem:[#allocation2] sm:$0xff]  ;;  %v123_v9 = vcombine.high %v27_v6, %v27_v6  ;;  %v140_v11 = vcombine.high %v28_v7, %v28_v7  ;;  %v2556_v13 = vld [vmem:[#allocation2 + $0x8] sm:$0xff]  ;;  %s2526_s0 = smov [#allocation5]  }
  0x15   :  { %v60_v3 = vshrl.u32 %v59_v0, 7  ;;  %v55_v14 = vcombine.high %v23_v8, %v23_v8  ;;  %v72_v16 = vcombine.high %v2556_v13, %v2556_v13  ;;  %vm904_vm1 = vcmask 1041409   ;;  %s2439_s20 = sshll.u32 %s2526_s0, 4  ;;  %s2440_s20 = int_to_ptr.vmem [resolvable:$true] %s2439_s20 }
  0x16   :  { %v58_v4 = vunpack.c.0.s8 %v57_v2  ;;  %vm906_vm2 = vcmask 1042434   ;;  %vm908_vm3 = vcmask 1043459   ;;  %vm910_vm4 = vcmask 1044484   ;;  %s2495_s21 = scalar_lea.vmem %s2440_s20, 2048  ;;  %p2500_p9 = scmp.lt.s32.totalorder %s2440_s20, %s2440_s20 }
  0x17   :  { %vm912_vm5 = vcmask 1045509   ;;  %vm914_vm6 = vcmask 1046534   ;;  %vm916_vm7 = vcmask 1047559   ;;  %vm1583_vm8 = vcmask 58368   ;;  %p2496_p8 = scmp.ne.s32.totalorder %s2440_s20, %s2495_s21  ;;  %p2501_p10 = scmp.lt.s32.totalorder %s2495_s21, %s2495_s21 }
  0x18   :  { %v2552_v5 = vsub.s32 %v58_v4, %v60_v3  ;;  %vm2416_vm9 = vcmask 64512  }
  0x19   :  { %p2502_p11 = por %p2501_p10, %p2500_p9 }
  0x1a   :  { %v130_v10 = vrot.slane %v27_v6, %v2552_v5  ;;  %v147_v12 = vrot.slane %v28_v7, %v2552_v5  ;;  %v2559_v15 = vrot.slane %v23_v8, %v2552_v5  ;;  %v2565_v17 = vrot.slane %v2556_v13, %v2552_v5 }
  0x1b   :  { %v137_v18 = vrot.slane %v123_v9, %v2552_v5  ;;  %v154_v20 = vrot.slane %v140_v11, %v2552_v5  ;;  %v2572_v24 = vrot.slane %v55_v14, %v2552_v5  ;;  %p2503_p12 = pnand %p2502_p11, %p2496_p8 }
  0x1c   :  { %v138_v19 = vcombine.high %v130_v10, %v130_v10  ;;  %v155_v21 = vcombine.high %v147_v12, %v147_v12  ;;  %v504_v22 = vsel %vm391_vm0, %v130_v10, -inf  ;;  %v532_v23 = vsel %vm391_vm0, %v147_v12, -inf }
  0x1d   :  { %v70_v25 = vcombine.high %v2559_v15, %v2559_v15  ;;  %v139_v26 = vcombine.high %v137_v18, %v137_v18  ;;  %v156_v27 = vcombine.high %v154_v20, %v154_v20  ;;  %v505_v28 = vrot.slane %v504_v22, 4 }
  0x1e   :  { %v511_v29 = vsel %vm391_vm0, %v138_v19, -inf  ;;  %v518_v31 = vsel %vm391_vm0, %v137_v18, -inf  ;;  %v533_v32 = vrot.slane %v532_v23, 4  ;;  %v539_v33 = vsel %vm391_vm0, %v155_v21, -inf }
  0x1f   :  { %v512_v30 = vrot.slane %v511_v29, 4  ;;  %v506_v34 = vmax.f32 %v504_v22, %v505_v28  ;;  %v519_v35 = vrot.slane %v518_v31, 4  ;;  %v525_v36 = vsel %vm391_vm0, %v139_v26, -inf }
  0x20   :  { %v540_v37 = vrot.slane %v539_v33, 4  ;;  %v526_v39 = vrot.slane %v525_v36, 4  ;;  %v534_v40 = vmax.f32 %v532_v23, %v533_v32  ;;  %v546_v41 = vsel %vm391_vm0, %v154_v20, -inf }
  0x21   :  { %v513_v38 = vmax.f32 %v511_v29, %v512_v30  ;;  %v507_v42 = vrot.slane %v506_v34, 2  ;;  %v520_v43 = vmax.f32 %v518_v31, %v519_v35  ;;  %v547_v45 = vrot.slane %v546_v41, 4 }
  0x22   :  { %v541_v44 = vmax.f32 %v539_v33, %v540_v37  ;;  %v527_v47 = vmax.f32 %v525_v36, %v526_v39  ;;  %v535_v48 = vrot.slane %v534_v40, 2  ;;  %v553_v49 = vsel %vm391_vm0, %v156_v27, -inf }
  0x23   :  { %v514_v46 = vrot.slane %v513_v38, 2  ;;  %v508_v50 = vmax.f32 %v506_v34, %v507_v42  ;;  %v521_v51 = vrot.slane %v520_v43, 2  ;;  %v548_v53 = vmax.f32 %v546_v41, %v547_v45 }
  0x24   :  { %v542_v52 = vrot.slane %v541_v44, 2  ;;  %v528_v55 = vrot.slane %v527_v47, 2  ;;  %v536_v56 = vmax.f32 %v534_v40, %v535_v48  ;;  %v554_v57 = vrot.slane %v553_v49, 4 }
  0x25   :  { %v515_v54 = vmax.f32 %v513_v38, %v514_v46  ;;  %v509_v58 = vrot.slane %v508_v50, 1  ;;  %v522_v59 = vmax.f32 %v520_v43, %v521_v51  ;;  %v549_v61 = vrot.slane %v548_v53, 2 }
  0x26   :  { %v543_v60 = vmax.f32 %v541_v44, %v542_v52  ;;  %v529_v63 = vmax.f32 %v527_v47, %v528_v55  ;;  %v537_v0 = vrot.slane %v536_v56, 1  ;;  %v555_v1 = vmax.f32 %v553_v49, %v554_v57 }
  0x27   :  { %v516_v62 = vrot.slane %v515_v54, 1  ;;  %v510_v2 = vmax.f32 %v508_v50, %v509_v58  ;;  %v523_v3 = vrot.slane %v522_v59, 1  ;;  %v550_v6 = vmax.f32 %v548_v53, %v549_v61 }
  0x28   :  { %v544_v4 = vrot.slane %v543_v60, 1  ;;  %v530_v8 = vrot.slane %v529_v63, 1  ;;  %v538_v9 = vmax.f32 %v536_v56, %v537_v0  ;;  %v556_v10 = vrot.slane %v555_v1, 2 }
  0x29   :  { %v517_v7 = vmax.f32 %v515_v54, %v516_v62  ;;  %v524_v11 = vmax.f32 %v522_v59, %v523_v3  ;;  %v551_v14 = vrot.slane %v550_v6, 1  ;;  %v71_v18 = vcombine.high %v2572_v24, %v2572_v24 }
  0x2a   :  { %v545_v12 = vmax.f32 %v543_v60, %v544_v4  ;;  %v531_v19 = vmax.f32 %v529_v63, %v530_v8  ;;  %v557_v20 = vmax.f32 %v555_v1, %v556_v10  ;;  %v86_v22 = vrot.slane %v72_v16, %v2552_v5  ;;  %v29_v63 = vld [vmem:[#allocation2 + $0x30] sm:$0xff] }
  0x2b   :  { %v925_v21 = vsel %vm904_vm1, %v517_v7, %v510_v2  ;;  %v552_v23 = vmax.f32 %v550_v6, %v551_v14  ;;  %v87_v27 = vcombine.high %v2565_v17, %v2565_v17  ;;  %v392_v28 = vsel %vm391_vm0, %v2559_v15, -inf }
  0x2c   :  { %v926_v26 = vsel %vm906_vm2, %v524_v11, %v925_v21  ;;  %v558_v29 = vrot.slane %v557_v20, 1  ;;  %v88_v31 = vcombine.high %v86_v22, %v86_v22  ;;  %v393_v32 = vrot.slane %v392_v28, 4  ;;  %v30_v21 = vld [vmem:[#allocation2 + $0x38] sm:$0xff] }
  0x2d   :  { %v927_v30 = vsel %vm908_vm3, %v531_v19, %v926_v26  ;;  %v399_v13 = vsel %vm391_vm0, %v70_v25, -inf  ;;  %v406_v16 = vsel %vm391_vm0, %v2572_v24, -inf  ;;  %v413_v34 = vsel %vm391_vm0, %v71_v18, -inf }
  0x2e   :  { %v928_v33 = vsel %vm910_vm4, %v538_v9, %v927_v30  ;;  %v559_v35 = vmax.f32 %v557_v20, %v558_v29  ;;  %v394_v37 = vmax.f32 %v392_v28, %v393_v32  ;;  %v400_v38 = vrot.slane %v399_v13, 4 }
  0x2f   :  { %v929_v36 = vsel %vm912_vm5, %v545_v12, %v928_v33  ;;  %v407_v40 = vrot.slane %v406_v16, 4  ;;  %v414_v41 = vrot.slane %v413_v34, 4  ;;  %v420_v42 = vsel %vm391_vm0, %v2565_v17, -inf }
  0x30   :  { %v930_v39 = vsel %vm914_vm6, %v552_v23, %v929_v36  ;;  %v395_v25 = vrot.slane %v394_v37, 2  ;;  %v401_v43 = vmax.f32 %v399_v13, %v400_v38  ;;  %v421_v44 = vrot.slane %v420_v42, 4 }
  0x31   :  { %v931_v15 = vsel %vm916_vm7, %v559_v35, %v930_v39  ;;  %v408_v24 = vmax.f32 %v406_v16, %v407_v40  ;;  %v415_v45 = vmax.f32 %v413_v34, %v414_v41  ;;  %v427_v46 = vsel %vm391_vm0, %v87_v27, -inf }
  0x32   :  { %1039 = vxpose.xlu1.b32.start.end [1/1] (short) (narrow) %v931_v15, 16  ;;  %v434_v47 = vsel %vm391_vm0, %v86_v22, -inf  ;;  %v396_v48 = vmax.f32 %v394_v37, %v395_v25  ;;  %v402_v49 = vrot.slane %v401_v43, 2  ;;  %v422_v50 = vmax.f32 %v420_v42, %v421_v44 }
  0x33   :  { %v428_v51 = vrot.slane %v427_v46, 4  ;;  %v409_v52 = vrot.slane %v408_v24, 2  ;;  %v416_v53 = vrot.slane %v415_v45, 2  ;;  %v435_v54 = vrot.slane %v434_v47, 4 }
  0x34   :  { %v441_v17 = vsel %vm391_vm0, %v88_v31, -inf  ;;  %v397_v55 = vrot.slane %v396_v48, 1  ;;  %v403_v56 = vmax.f32 %v401_v43, %v402_v49  ;;  %v423_v57 = vrot.slane %v422_v50, 2 }
  0x35   :  { %v429_v58 = vmax.f32 %v427_v46, %v428_v51  ;;  %v410_v59 = vmax.f32 %v408_v24, %v409_v52  ;;  %v417_v60 = vmax.f32 %v415_v45, %v416_v53  ;;  %v436_v61 = vmax.f32 %v434_v47, %v435_v54 }
  0x36   :  { %v442_v62 = vrot.slane %v441_v17, 4  ;;  %v398_v0 = vmax.f32 %v396_v48, %v397_v55  ;;  %v404_v1 = vrot.slane %v403_v56, 1  ;;  %v424_v2 = vmax.f32 %v422_v50, %v423_v57 }
  0x37   :  { %v430_v3 = vrot.slane %v429_v58, 2  ;;  %v411_v4 = vrot.slane %v410_v59, 1  ;;  %v418_v6 = vrot.slane %v417_v60, 1  ;;  %v437_v7 = vrot.slane %v436_v61, 2 }
  0x38   :  { %v443_v8 = vmax.f32 %v441_v17, %v442_v62  ;;  %v405_v9 = vmax.f32 %v403_v56, %v404_v1  ;;  %v425_v10 = vrot.slane %v424_v2, 1  ;;  %v157_v12 = vcombine.high %v29_v63, %v29_v63 }
  0x39   :  { %v431_v11 = vmax.f32 %v429_v58, %v430_v3  ;;  %v412_v14 = vmax.f32 %v410_v59, %v411_v4  ;;  %v419_v18 = vmax.f32 %v417_v60, %v418_v6  ;;  %v438_v19 = vmax.f32 %v436_v61, %v437_v7 }
  0x3a   :  { %v444_v20 = vrot.slane %v443_v8, 2  ;;  %v426_v22 = vmax.f32 %v424_v2, %v425_v10  ;;  %v905_v26 = vsel %vm904_vm1, %v405_v9, %v398_v0  ;;  %v164_v27 = vrot.slane %v29_v63, %v2552_v5 }
  0x3b   :  { %v432_v23 = vrot.slane %v431_v11, 1  ;;  %v439_v28 = vrot.slane %v438_v19, 1  ;;  %v907_v30 = vsel %vm906_vm2, %v412_v14, %v905_v26  ;;  %v171_v31 = vrot.slane %v157_v12, %v2552_v5 }
  0x3c   :  { %v445_v29 = vmax.f32 %v443_v8, %v444_v20  ;;  %v909_v33 = vsel %vm908_vm3, %v419_v18, %v907_v30  ;;  %v172_v13 = vcombine.high %v164_v27, %v164_v27  ;;  %v174_v16 = vcombine.high %v30_v21, %v30_v21 }
  0x3d   :  { %v433_v32 = vmax.f32 %v431_v11, %v432_v23  ;;  %v440_v34 = vmax.f32 %v438_v19, %v439_v28  ;;  %v911_v36 = vsel %vm910_vm4, %v426_v22, %v909_v33  ;;  %v173_v37 = vcombine.high %v171_v31, %v171_v31  ;;  %v25_v19 = vld [vmem:[#allocation2 + $0x10] sm:$0xff] }
  0x3e   :  { %v446_v35 = vrot.slane %v445_v29, 1  ;;  %v181_v39 = vrot.slane %v30_v21, %v2552_v5  ;;  %v188_v40 = vrot.slane %v174_v16, %v2552_v5  ;;  %v560_v41 = vsel %vm391_vm0, %v164_v27, -inf }
  0x3f   :  { %v913_v38 = vsel %vm912_vm5, %v433_v32, %v911_v36  ;;  %v561_v25 = vrot.slane %v560_v41, 4  ;;  %v567_v43 = vsel %vm391_vm0, %v172_v13, -inf  ;;  %v574_v46 = vsel %vm391_vm0, %v171_v31, -inf  ;;  %v26_v36 = vld [vmem:[#allocation2 + $0x18] sm:$0xff] }
  0x40   :  { %v447_v42 = vmax.f32 %v445_v29, %v446_v35  ;;  %v915_v15 = vsel %vm914_vm6, %v440_v34, %v913_v38  ;;  %v189_v44 = vcombine.high %v181_v39, %v181_v39  ;;  %v190_v24 = vcombine.high %v188_v40, %v188_v40 }
  0x41   :  { %v568_v45 = vrot.slane %v567_v43, 4  ;;  %v562_v48 = vmax.f32 %v560_v41, %v561_v25  ;;  %v575_v49 = vrot.slane %v574_v46, 4  ;;  %v581_v50 = vsel %vm391_vm0, %v173_v37, -inf }
  0x42   :  { %v917_v47 = vsel %vm916_vm7, %v447_v42, %v915_v15  ;;  %v582_v52 = vrot.slane %v581_v50, 4  ;;  %v588_v53 = vsel %vm391_vm0, %v181_v39, -inf  ;;  %v595_v54 = vsel %vm391_vm0, %v189_v44, -inf }
  0x43   :  { %975 = vxpose.xlu0.b32.start.end [1/1] (short) (narrow) %v917_v47, 16  ;;  %v569_v51 = vmax.f32 %v567_v43, %v568_v45  ;;  %v563_v17 = vrot.slane %v562_v48, 2  ;;  %v576_v55 = vmax.f32 %v574_v46, %v575_v49  ;;  %v589_v56 = vrot.slane %v588_v53, 4 }
  0x44   :  { %v596_v57 = vrot.slane %v595_v54, 4  ;;  %v583_v59 = vmax.f32 %v581_v50, %v582_v52  ;;  %v602_v60 = vsel %vm391_vm0, %v188_v40, -inf  ;;  %v609_v61 = vsel %vm391_vm0, %v190_v24, -inf }
  0x45   :  { %v570_v58 = vrot.slane %v569_v51, 2  ;;  %v564_v62 = vmax.f32 %v562_v48, %v563_v17  ;;  %v577_v63 = vrot.slane %v576_v55, 2  ;;  %v590_v0 = vmax.f32 %v588_v53, %v589_v56 }
  0x46   :  { %v597_v1 = vmax.f32 %v595_v54, %v596_v57  ;;  %v584_v3 = vrot.slane %v583_v59, 2  ;;  %v603_v4 = vrot.slane %v602_v60, 4  ;;  %v610_v6 = vrot.slane %v609_v61, 4 }
  0x47   :  { %v571_v2 = vmax.f32 %v569_v51, %v570_v58  ;;  %v565_v7 = vrot.slane %v564_v62, 1  ;;  %v578_v8 = vmax.f32 %v576_v55, %v577_v63  ;;  %v591_v9 = vrot.slane %v590_v0, 2 }
  0x48   :  { %v598_v10 = vrot.slane %v597_v1, 2  ;;  %v585_v12 = vmax.f32 %v583_v59, %v584_v3  ;;  %v604_v14 = vmax.f32 %v602_v60, %v603_v4  ;;  %v611_v18 = vmax.f32 %v609_v61, %v610_v6 }
  0x49   :  { %v572_v11 = vrot.slane %v571_v2, 1  ;;  %v566_v20 = vmax.f32 %v564_v62, %v565_v7  ;;  %v579_v21 = vrot.slane %v578_v8, 1  ;;  %v592_v22 = vmax.f32 %v590_v0, %v591_v9 }
  0x4a   :  { %v599_v23 = vmax.f32 %v597_v1, %v598_v10  ;;  %v586_v27 = vrot.slane %v585_v12, 1  ;;  %v605_v28 = vrot.slane %v604_v14, 2  ;;  %v612_v29 = vrot.slane %v611_v18, 2 }
  0x4b   :  { %v573_v26 = vmax.f32 %v571_v2, %v572_v11  ;;  %v580_v30 = vmax.f32 %v578_v8, %v579_v21  ;;  %v593_v31 = vrot.slane %v592_v22, 1  ;;  %v89_v33 = vcombine.high %v25_v19, %v25_v19 }
  0x4c   :  { %v600_v32 = vrot.slane %v599_v23, 1  ;;  %v587_v13 = vmax.f32 %v585_v12, %v586_v27  ;;  %v606_v16 = vmax.f32 %v604_v14, %v605_v28  ;;  %v613_v34 = vmax.f32 %v611_v18, %v612_v29 }
  0x4d   :  { %v932_v35 = vsel %vm904_vm1, %v573_v26, %v566_v20  ;;  %v594_v37 = vmax.f32 %v592_v22, %v593_v31  ;;  %v96_v40 = vrot.slane %v25_v19, %v2552_v5  ;;  %v103_v25 = vrot.slane %v89_v33, %v2552_v5 }
  0x4e   :  { %v601_v38 = vmax.f32 %v599_v23, %v600_v32  ;;  %v933_v39 = vsel %vm906_vm2, %v580_v30, %v932_v35  ;;  %v607_v41 = vrot.slane %v606_v16, 1  ;;  %v614_v42 = vrot.slane %v613_v34, 1 }
  0x4f   :  { %v934_v15 = vsel %vm908_vm3, %v587_v13, %v933_v39  ;;  %v104_v44 = vcombine.high %v96_v40, %v96_v40  ;;  %v106_v24 = vcombine.high %v26_v36, %v26_v36  ;;  %v113_v45 = vrot.slane %v26_v36, %v2552_v5 }
  0x50   :  { %v935_v43 = vsel %vm910_vm4, %v594_v37, %v934_v15  ;;  %v608_v46 = vmax.f32 %v606_v16, %v607_v41  ;;  %v615_v47 = vmax.f32 %v613_v34, %v614_v42  ;;  %v105_v49 = vcombine.high %v103_v25, %v103_v25  ;;  %v33_v34 = vld [vmem:[#allocation2 + $0x50] sm:$0xff] }
  0x51   :  { %v936_v48 = vsel %vm912_vm5, %v601_v38, %v935_v43  ;;  %v120_v50 = vrot.slane %v106_v24, %v2552_v5  ;;  %v121_v51 = vcombine.high %v113_v45, %v113_v45  ;;  %v448_v52 = vsel %vm391_vm0, %v96_v40, -inf }
  0x52   :  { %v455_v53 = vsel %vm391_vm0, %v104_v44, -inf  ;;  %v937_v54 = vsel %vm914_vm6, %v608_v46, %v936_v48  ;;  %v449_v17 = vrot.slane %v448_v52, 4  ;;  %v462_v56 = vsel %vm391_vm0, %v103_v25, -inf  ;;  %v34_v44 = vld [vmem:[#allocation2 + $0x58] sm:$0xff] }
  0x53   :  { %v456_v55 = vrot.slane %v455_v53, 4  ;;  %v938_v57 = vsel %vm916_vm7, %v615_v47, %v937_v54  ;;  %v122_v58 = vcombine.high %v120_v50, %v120_v50  ;;  %v463_v59 = vrot.slane %v462_v56, 4 }
  0x54   :  { %v469_v60 = vsel %vm391_vm0, %v105_v49, -inf  ;;  %1071 = vxpose.xlu1.b32.start.end [1/1] (short) (narrow) %v938_v57, 16  ;;  %v450_v61 = vmax.f32 %v448_v52, %v449_v17  ;;  %v476_v0 = vsel %vm391_vm0, %v113_v45, -inf  ;;  %v483_v3 = vsel %vm391_vm0, %v121_v51, -inf }
  0x55   :  { %v457_v62 = vmax.f32 %v455_v53, %v456_v55  ;;  %v470_v63 = vrot.slane %v469_v60, 4  ;;  %v464_v1 = vmax.f32 %v462_v56, %v463_v59  ;;  %v477_v2 = vrot.slane %v476_v0, 4 }
  0x56   :  { %v490_v4 = vsel %vm391_vm0, %v120_v50, -inf  ;;  %v451_v6 = vrot.slane %v450_v61, 2  ;;  %v484_v9 = vrot.slane %v483_v3, 4  ;;  %v497_v14 = vsel %vm391_vm0, %v122_v58, -inf }
  0x57   :  { %v458_v7 = vrot.slane %v457_v62, 2  ;;  %v471_v8 = vmax.f32 %v469_v60, %v470_v63  ;;  %v465_v10 = vrot.slane %v464_v1, 2  ;;  %v478_v11 = vmax.f32 %v476_v0, %v477_v2 }
  0x58   :  { %v491_v12 = vrot.slane %v490_v4, 4  ;;  %v452_v18 = vmax.f32 %v450_v61, %v451_v6  ;;  %v485_v21 = vmax.f32 %v483_v3, %v484_v9  ;;  %v498_v27 = vrot.slane %v497_v14, 4 }
  0x59   :  { %v459_v19 = vmax.f32 %v457_v62, %v458_v7  ;;  %v472_v20 = vrot.slane %v471_v8, 2  ;;  %v466_v22 = vmax.f32 %v464_v1, %v465_v10  ;;  %v479_v23 = vrot.slane %v478_v11, 2 }
  0x5a   :  { %v492_v26 = vmax.f32 %v490_v4, %v491_v12  ;;  %v453_v28 = vrot.slane %v452_v18, 1  ;;  %v486_v31 = vrot.slane %v485_v21, 2  ;;  %v499_v16 = vmax.f32 %v497_v14, %v498_v27 }
  0x5b   :  { %v460_v29 = vrot.slane %v459_v19, 1  ;;  %v473_v30 = vmax.f32 %v471_v8, %v472_v20  ;;  %v467_v32 = vrot.slane %v466_v22, 1  ;;  %v480_v33 = vmax.f32 %v478_v11, %v479_v23 }
  0x5c   :  { %v493_v13 = vrot.slane %v492_v26, 2  ;;  %v454_v35 = vmax.f32 %v452_v18, %v453_v28  ;;  %v487_v38 = vmax.f32 %v485_v21, %v486_v31  ;;  %v500_v42 = vrot.slane %v499_v16, 2 }
  0x5d   :  { %v461_v36 = vmax.f32 %v459_v19, %v460_v29  ;;  %v474_v37 = vrot.slane %v473_v30, 1  ;;  %v468_v39 = vmax.f32 %v466_v22, %v467_v32  ;;  %v481_v40 = vrot.slane %v480_v33, 1 }
  0x5e   :  { %v494_v41 = vmax.f32 %v492_v26, %v493_v13  ;;  %v488_v25 = vrot.slane %v487_v38, 1  ;;  %v225_v24 = vcombine.high %v33_v34, %v33_v34  ;;  %v501_v47 = vmax.f32 %v499_v16, %v500_v42 }
  0x5f   :  { %v475_v15 = vmax.f32 %v473_v30, %v474_v37  ;;  %v918_v43 = vsel %vm904_vm1, %v461_v36, %v454_v35  ;;  %v482_v45 = vmax.f32 %v480_v33, %v481_v40  ;;  %v232_v51 = vrot.slane %v33_v34, %v2552_v5 }
  0x60   :  { %v495_v46 = vrot.slane %v494_v41, 1  ;;  %v919_v48 = vsel %vm906_vm2, %v468_v39, %v918_v43  ;;  %v489_v49 = vmax.f32 %v487_v38, %v488_v25  ;;  %v239_v52 = vrot.slane %v225_v24, %v2552_v5  ;;  %v31_v43 = vld [vmem:[#allocation2 + $0x40] sm:$0xff] }
  0x61   :  { %v920_v50 = vsel %vm908_vm3, %v475_v15, %v919_v48  ;;  %v502_v54 = vrot.slane %v501_v47, 1  ;;  %v242_v55 = vcombine.high %v34_v44, %v34_v44  ;;  %v240_v57 = vcombine.high %v232_v51, %v232_v51 }
  0x62   :  { %v496_v53 = vmax.f32 %v494_v41, %v495_v46  ;;  %v921_v17 = vsel %vm910_vm4, %v482_v45, %v920_v50  ;;  %v241_v58 = vcombine.high %v239_v52, %v239_v52  ;;  %v249_v59 = vrot.slane %v34_v44, %v2552_v5 }
  0x63   :  { %v922_v56 = vsel %vm912_vm5, %v489_v49, %v921_v17  ;;  %v503_v60 = vmax.f32 %v501_v47, %v502_v54  ;;  %v256_v62 = vrot.slane %v242_v55, %v2552_v5  ;;  %v672_v63 = vsel %vm391_vm0, %v232_v51, -inf  ;;  %v32_v54 = vld [vmem:[#allocation2 + $0x48] sm:$0xff] }
  0x64   :  { %v923_v61 = vsel %vm914_vm6, %v496_v53, %v922_v56  ;;  %v257_v0 = vcombine.high %v249_v59, %v249_v59  ;;  %v673_v1 = vrot.slane %v672_v63, 4  ;;  %v679_v2 = vsel %vm391_vm0, %v240_v57, -inf }
  0x65   :  { %v686_v3 = vsel %vm391_vm0, %v239_v52, -inf  ;;  %v924_v4 = vsel %vm916_vm7, %v503_v60, %v923_v61  ;;  %v258_v6 = vcombine.high %v256_v62, %v256_v62  ;;  %v680_v7 = vrot.slane %v679_v2, 4 }
  0x66   :  { %v687_v8 = vrot.slane %v686_v3, 4  ;;  %1007 = vxpose.xlu0.b32.start.end [1/1] (short) (narrow) %v924_v4, 16  ;;  %v674_v9 = vmax.f32 %v672_v63, %v673_v1  ;;  %v693_v10 = vsel %vm391_vm0, %v241_v58, -inf  ;;  %v700_v11 = vsel %vm391_vm0, %v249_v59, -inf }
  0x67   :  { %v707_v12 = vsel %vm391_vm0, %v257_v0, -inf  ;;  %v681_v14 = vmax.f32 %v679_v2, %v680_v7  ;;  %v694_v19 = vrot.slane %v693_v10, 4  ;;  %v701_v20 = vrot.slane %v700_v11, 4 }
  0x68   :  { %v688_v18 = vmax.f32 %v686_v3, %v687_v8  ;;  %v675_v21 = vrot.slane %v674_v9, 2  ;;  %v708_v22 = vrot.slane %v707_v12, 4  ;;  %v714_v23 = vsel %vm391_vm0, %v256_v62, -inf }
  0x69   :  { %v721_v26 = vsel %vm391_vm0, %v258_v6, -inf  ;;  %v682_v27 = vrot.slane %v681_v14, 2  ;;  %v695_v29 = vmax.f32 %v693_v10, %v694_v19  ;;  %v702_v30 = vmax.f32 %v700_v11, %v701_v20 }
  0x6a   :  { %v689_v28 = vrot.slane %v688_v18, 2  ;;  %v676_v31 = vmax.f32 %v674_v9, %v675_v21  ;;  %v709_v32 = vmax.f32 %v707_v12, %v708_v22  ;;  %v715_v33 = vrot.slane %v714_v23, 4 }
  0x6b   :  { %v722_v13 = vrot.slane %v721_v26, 4  ;;  %v683_v16 = vmax.f32 %v681_v14, %v682_v27  ;;  %v696_v35 = vrot.slane %v695_v29, 2  ;;  %v703_v36 = vrot.slane %v702_v30, 2 }
  0x6c   :  { %v690_v34 = vmax.f32 %v688_v18, %v689_v28  ;;  %v677_v37 = vrot.slane %v676_v31, 1  ;;  %v710_v38 = vrot.slane %v709_v32, 2  ;;  %v716_v39 = vmax.f32 %v714_v23, %v715_v33 }
  0x6d   :  { %v723_v40 = vmax.f32 %v721_v26, %v722_v13  ;;  %v684_v41 = vrot.slane %v683_v16, 1  ;;  %v697_v15 = vmax.f32 %v695_v29, %v696_v35  ;;  %v704_v25 = vmax.f32 %v702_v30, %v703_v36 }
  0x6e   :  { %v691_v42 = vrot.slane %v690_v34, 1  ;;  %v678_v44 = vmax.f32 %v676_v31, %v677_v37  ;;  %v711_v24 = vmax.f32 %v709_v32, %v710_v38  ;;  %v717_v45 = vrot.slane %v716_v39, 2 }
  0x6f   :  { %v724_v46 = vrot.slane %v723_v40, 2  ;;  %v685_v47 = vmax.f32 %v683_v16, %v684_v41  ;;  %v698_v49 = vrot.slane %v697_v15, 1  ;;  %v705_v50 = vrot.slane %v704_v25, 1 }
  0x70   :  { %v692_v48 = vmax.f32 %v690_v34, %v691_v42  ;;  %v712_v51 = vrot.slane %v711_v24, 1  ;;  %v718_v52 = vmax.f32 %v716_v39, %v717_v45  ;;  %v191_v17 = vcombine.high %v31_v43, %v31_v43 }
  0x71   :  { %v725_v53 = vmax.f32 %v723_v40, %v724_v46  ;;  %v699_v55 = vmax.f32 %v697_v15, %v698_v49  ;;  %v706_v56 = vmax.f32 %v704_v25, %v705_v50  ;;  %v946_v57 = vsel %vm904_vm1, %v685_v47, %v678_v44 }
  0x72   :  { %v198_v58 = vrot.slane %v31_v43, %v2552_v5  ;;  %v713_v59 = vmax.f32 %v711_v24, %v712_v51  ;;  %v719_v60 = vrot.slane %v718_v52, 1  ;;  %v947_v62 = vsel %vm906_vm2, %v692_v48, %v946_v57 }
  0x73   :  { %v726_v61 = vrot.slane %v725_v53, 1  ;;  %v948_v63 = vsel %vm908_vm3, %v699_v55, %v947_v62  ;;  %v205_v0 = vrot.slane %v191_v17, %v2552_v5  ;;  %v208_v2 = vcombine.high %v32_v54, %v32_v54 }
  0x74   :  { %v206_v1 = vcombine.high %v198_v58, %v198_v58  ;;  %v720_v3 = vmax.f32 %v718_v52, %v719_v60  ;;  %v949_v6 = vsel %vm910_vm4, %v706_v56, %v948_v63  ;;  %v215_v7 = vrot.slane %v32_v54, %v2552_v5 }
  0x75   :  { %v727_v4 = vmax.f32 %v725_v53, %v726_v61  ;;  %v950_v8 = vsel %vm912_vm5, %v713_v59, %v949_v6  ;;  %v207_v9 = vcombine.high %v205_v0, %v205_v0  ;;  %v222_v10 = vrot.slane %v208_v2, %v2552_v5  ;;  %v37_v53 = vld [vmem:[#allocation2 + $0x70] sm:$0xff] }
  0x76   :  { %v616_v11 = vsel %vm391_vm0, %v198_v58, -inf  ;;  %v951_v12 = vsel %vm914_vm6, %v720_v3, %v950_v8  ;;  %v223_v14 = vcombine.high %v215_v7, %v215_v7  ;;  %v623_v19 = vsel %vm391_vm0, %v206_v1, -inf }
  0x77   :  { %v617_v18 = vrot.slane %v616_v11, 4  ;;  %v952_v20 = vsel %vm916_vm7, %v727_v4, %v951_v12  ;;  %v224_v21 = vcombine.high %v222_v10, %v222_v10  ;;  %v624_v22 = vrot.slane %v623_v19, 4 }
  0x78   :  { %v630_v23 = vsel %vm391_vm0, %v205_v0, -inf  ;;  %1135 = vxpose.xlu1.b32.start.end [1/1] (short) (narrow) %v952_v20, 16  ;;  %v637_v28 = vsel %vm391_vm0, %v207_v9, -inf  ;;  %v644_v29 = vsel %vm391_vm0, %v215_v7, -inf  ;;  %v651_v33 = vsel %vm391_vm0, %v223_v14, -inf  ;;  %v38_v0 = vld [vmem:[#allocation2 + $0x78] sm:$0xff] }
  0x79   :  { %v618_v26 = vmax.f32 %v616_v11, %v617_v18  ;;  %v631_v27 = vrot.slane %v630_v23, 4  ;;  %v625_v30 = vmax.f32 %v623_v19, %v624_v22  ;;  %v638_v31 = vrot.slane %v637_v28, 4 }
  0x7a   :  { %v645_v32 = vrot.slane %v644_v29, 4  ;;  %v652_v34 = vrot.slane %v651_v33, 4  ;;  %v658_v35 = vsel %vm391_vm0, %v222_v10, -inf  ;;  %v665_v15 = vsel %vm391_vm0, %v224_v21, -inf }
  0x7b   :  { %v619_v13 = vrot.slane %v618_v26, 2  ;;  %v632_v16 = vmax.f32 %v630_v23, %v631_v27  ;;  %v626_v36 = vrot.slane %v625_v30, 2  ;;  %v639_v37 = vmax.f32 %v637_v28, %v638_v31 }
  0x7c   :  { %v646_v38 = vmax.f32 %v644_v29, %v645_v32  ;;  %v659_v39 = vrot.slane %v658_v35, 4  ;;  %v653_v42 = vmax.f32 %v651_v33, %v652_v34  ;;  %v666_v48 = vrot.slane %v665_v15, 4 }
  0x7d   :  { %v620_v40 = vmax.f32 %v618_v26, %v619_v13  ;;  %v633_v41 = vrot.slane %v632_v16, 2  ;;  %v627_v25 = vmax.f32 %v625_v30, %v626_v36  ;;  %v640_v43 = vrot.slane %v639_v37, 2 }
  0x7e   :  { %v647_v44 = vrot.slane %v646_v38, 2  ;;  %v660_v24 = vmax.f32 %v658_v35, %v659_v39  ;;  %v654_v47 = vrot.slane %v653_v42, 2  ;;  %v667_v56 = vmax.f32 %v665_v15, %v666_v48 }
  0x7f   :  { %v621_v45 = vrot.slane %v620_v40, 1  ;;  %v634_v46 = vmax.f32 %v632_v16, %v633_v41  ;;  %v628_v49 = vrot.slane %v627_v25, 1  ;;  %v641_v50 = vmax.f32 %v639_v37, %v640_v43 }
  0x80   :  { %v648_v51 = vmax.f32 %v646_v38, %v647_v44  ;;  %v661_v52 = vrot.slane %v660_v24, 2  ;;  %v655_v55 = vmax.f32 %v653_v42, %v654_v47  ;;  %v668_v63 = vrot.slane %v667_v56, 2 }
  0x81   :  { %v622_v54 = vmax.f32 %v620_v40, %v621_v45  ;;  %v635_v17 = vrot.slane %v634_v46, 1  ;;  %v629_v57 = vmax.f32 %v627_v25, %v628_v49  ;;  %v642_v58 = vrot.slane %v641_v50, 1 }
  0x82   :  { %v649_v59 = vrot.slane %v648_v51, 1  ;;  %v662_v60 = vmax.f32 %v660_v24, %v661_v52  ;;  %v656_v62 = vrot.slane %v655_v55, 1  ;;  %v293_v1 = vcombine.high %v37_v53, %v37_v53 }
  0x83   :  { %v636_v61 = vmax.f32 %v634_v46, %v635_v17  ;;  %v643_v2 = vmax.f32 %v641_v50, %v642_v58  ;;  %v939_v6 = vsel %vm904_vm1, %v629_v57, %v622_v54  ;;  %v669_v8 = vmax.f32 %v667_v56, %v668_v63  ;;  %v35_v63 = vld [vmem:[#allocation2 + $0x60] sm:$0xff] }
  0x84   :  { %v650_v3 = vmax.f32 %v648_v51, %v649_v59  ;;  %v663_v4 = vrot.slane %v662_v60, 1  ;;  %v657_v7 = vmax.f32 %v655_v55, %v656_v62  ;;  %v300_v10 = vrot.slane %v37_v53, %v2552_v5 }
  0x85   :  { %v940_v9 = vsel %vm906_vm2, %v636_v61, %v939_v6  ;;  %v307_v14 = vrot.slane %v293_v1, %v2552_v5  ;;  %v310_v18 = vcombine.high %v38_v0, %v38_v0  ;;  %v670_v19 = vrot.slane %v669_v8, 1 }
  0x86   :  { %v664_v11 = vmax.f32 %v662_v60, %v663_v4  ;;  %v941_v12 = vsel %vm908_vm3, %v643_v2, %v940_v9  ;;  %v308_v21 = vcombine.high %v300_v10, %v300_v10  ;;  %v317_v22 = vrot.slane %v38_v0, %v2552_v5 }
  0x87   :  { %v942_v20 = vsel %vm910_vm4, %v650_v3, %v941_v12  ;;  %v309_v26 = vcombine.high %v307_v14, %v307_v14  ;;  %v324_v27 = vrot.slane %v310_v18, %v2552_v5  ;;  %v784_v28 = vsel %vm391_vm0, %v300_v10, -inf }
  0x88   :  { %v943_v23 = vsel %vm912_vm5, %v657_v7, %v942_v20  ;;  %v671_v29 = vmax.f32 %v669_v8, %v670_v19  ;;  %v325_v31 = vcombine.high %v317_v22, %v317_v22  ;;  %v785_v32 = vrot.slane %v784_v28, 4 }
  0x89   :  { %v944_v30 = vsel %vm914_vm6, %v664_v11, %v943_v23  ;;  %v326_v33 = vcombine.high %v324_v27, %v324_v27  ;;  %v791_v13 = vsel %vm391_vm0, %v308_v21, -inf  ;;  %v798_v16 = vsel %vm391_vm0, %v307_v14, -inf  ;;  %v36_v21 = vld [vmem:[#allocation2 + $0x68] sm:$0xff] }
  0x8a   :  { %v805_v34 = vsel %vm391_vm0, %v309_v26, -inf  ;;  %v945_v35 = vsel %vm916_vm7, %v671_v29, %v944_v30  ;;  %v786_v36 = vmax.f32 %v784_v28, %v785_v32  ;;  %v792_v37 = vrot.slane %v791_v13, 4 }
  0x8b   :  { %v799_v38 = vrot.slane %v798_v16, 4  ;;  %1103 = vxpose.xlu0.b32.start.end [1/1] (short) (narrow) %v945_v35, 16  ;;  %v806_v39 = vrot.slane %v805_v34, 4  ;;  %v812_v40 = vsel %vm391_vm0, %v317_v22, -inf  ;;  %v819_v41 = vsel %vm391_vm0, %v325_v31, -inf }
  0x8c   :  { %v826_v42 = vsel %vm391_vm0, %v324_v27, -inf  ;;  %v787_v15 = vrot.slane %v786_v36, 2  ;;  %v793_v25 = vmax.f32 %v791_v13, %v792_v37  ;;  %v813_v44 = vrot.slane %v812_v40, 4 }
  0x8d   :  { %v800_v43 = vmax.f32 %v798_v16, %v799_v38  ;;  %v807_v24 = vmax.f32 %v805_v34, %v806_v39  ;;  %v820_v45 = vrot.slane %v819_v41, 4  ;;  %v827_v46 = vrot.slane %v826_v42, 4 }
  0x8e   :  { %v833_v47 = vsel %vm391_vm0, %v326_v33, -inf  ;;  %v788_v48 = vmax.f32 %v786_v36, %v787_v15  ;;  %v794_v49 = vrot.slane %v793_v25, 2  ;;  %v814_v51 = vmax.f32 %v812_v40, %v813_v44 }
  0x8f   :  { %v801_v50 = vrot.slane %v800_v43, 2  ;;  %v808_v52 = vrot.slane %v807_v24, 2  ;;  %v821_v53 = vmax.f32 %v819_v41, %v820_v45  ;;  %v828_v54 = vmax.f32 %v826_v42, %v827_v46 }
  0x90   :  { %v834_v17 = vrot.slane %v833_v47, 4  ;;  %v789_v55 = vrot.slane %v788_v48, 1  ;;  %v795_v56 = vmax.f32 %v793_v25, %v794_v49  ;;  %v815_v58 = vrot.slane %v814_v51, 2 }
  0x91   :  { %v802_v57 = vmax.f32 %v800_v43, %v801_v50  ;;  %v809_v59 = vmax.f32 %v807_v24, %v808_v52  ;;  %v822_v60 = vrot.slane %v821_v53, 2  ;;  %v829_v61 = vrot.slane %v828_v54, 2 }
  0x92   :  { %v835_v62 = vmax.f32 %v833_v47, %v834_v17  ;;  %v790_v0 = vmax.f32 %v788_v48, %v789_v55  ;;  %v796_v1 = vrot.slane %v795_v56, 1  ;;  %v816_v3 = vmax.f32 %v814_v51, %v815_v58 }
  0x93   :  { %v803_v2 = vrot.slane %v802_v57, 1  ;;  %v810_v4 = vrot.slane %v809_v59, 1  ;;  %v823_v6 = vmax.f32 %v821_v53, %v822_v60  ;;  %v830_v7 = vmax.f32 %v828_v54, %v829_v61 }
  0x94   :  { %v836_v8 = vrot.slane %v835_v62, 2  ;;  %v797_v9 = vmax.f32 %v795_v56, %v796_v1  ;;  %v817_v11 = vrot.slane %v816_v3, 1  ;;  %v259_v12 = vcombine.high %v35_v63, %v35_v63 }
  0x95   :  { %v804_v10 = vmax.f32 %v802_v57, %v803_v2  ;;  %v811_v14 = vmax.f32 %v809_v59, %v810_v4  ;;  %v824_v18 = vrot.slane %v823_v6, 1  ;;  %v831_v19 = vrot.slane %v830_v7, 1 }
  0x96   :  { %v837_v20 = vmax.f32 %v835_v62, %v836_v8  ;;  %v818_v22 = vmax.f32 %v816_v3, %v817_v11  ;;  %v960_v23 = vsel %vm904_vm1, %v797_v9, %v790_v0  ;;  %v266_v26 = vrot.slane %v35_v63, %v2552_v5 }
  0x97   :  { %v273_v27 = vrot.slane %v259_v12, %v2552_v5  ;;  %v825_v28 = vmax.f32 %v823_v6, %v824_v18  ;;  %v832_v29 = vmax.f32 %v830_v7, %v831_v19  ;;  %v961_v31 = vsel %vm906_vm2, %v804_v10, %v960_v23 }
  0x98   :  { %v838_v30 = vrot.slane %v837_v20, 1  ;;  %v962_v32 = vsel %vm908_vm3, %v811_v14, %v961_v31  ;;  %v274_v33 = vcombine.high %v266_v26, %v266_v26  ;;  %v276_v16 = vcombine.high %v36_v21, %v36_v21 }
  0x99   :  { %v275_v13 = vcombine.high %v273_v27, %v273_v27  ;;  %v963_v35 = vsel %vm910_vm4, %v818_v22, %v962_v32  ;;  %v283_v36 = vrot.slane %v36_v21, %v2552_v5  ;;  %v728_v37 = vsel %vm391_vm0, %v266_v26, -inf }
  0x9a   :  { %v839_v34 = vmax.f32 %v837_v20, %v838_v30  ;;  %v964_v38 = vsel %vm912_vm5, %v825_v28, %v963_v35  ;;  %v290_v39 = vrot.slane %v276_v16, %v2552_v5  ;;  %v729_v40 = vrot.slane %v728_v37, 4 }
  0x9b   :  { %v735_v41 = vsel %vm391_vm0, %v274_v33, -inf  ;;  %v965_v42 = vsel %vm914_vm6, %v832_v29, %v964_v38  ;;  %v291_v15 = vcombine.high %v283_v36, %v283_v36  ;;  %v742_v43 = vsel %vm391_vm0, %v273_v27, -inf }
  0x9c   :  { %v736_v25 = vrot.slane %v735_v41, 4  ;;  %v966_v44 = vsel %vm916_vm7, %v839_v34, %v965_v42  ;;  %v292_v24 = vcombine.high %v290_v39, %v290_v39  ;;  %v730_v45 = vmax.f32 %v728_v37, %v729_v40 }
  0x9d   :  { %v743_v46 = vrot.slane %v742_v43, 4  ;;  %1199 = vxpose.xlu1.b32.start.end [1/1] (short) (narrow) %v966_v44, 16  ;;  %v749_v48 = vsel %vm391_vm0, %v275_v13, -inf  ;;  %v756_v49 = vsel %vm391_vm0, %v283_v36, -inf  ;;  %v763_v50 = vsel %vm391_vm0, %v291_v15, -inf }
  0x9e   :  { %v737_v47 = vmax.f32 %v735_v41, %v736_v25  ;;  %v731_v51 = vrot.slane %v730_v45, 2  ;;  %v750_v53 = vrot.slane %v749_v48, 4  ;;  %v757_v54 = vrot.slane %v756_v49, 4 }
  0x9f   :  { %v744_v52 = vmax.f32 %v742_v43, %v743_v46  ;;  %v764_v55 = vrot.slane %v763_v50, 4  ;;  %v770_v56 = vsel %vm391_vm0, %v290_v39, -inf  ;;  %v777_v57 = vsel %vm391_vm0, %v292_v24, -inf }
  0xa0   :  { %v738_v17 = vrot.slane %v737_v47, 2  ;;  %v732_v58 = vmax.f32 %v730_v45, %v731_v51  ;;  %v751_v60 = vmax.f32 %v749_v48, %v750_v53  ;;  %v758_v61 = vmax.f32 %v756_v49, %v757_v54 }
  0xa1   :  { %v745_v59 = vrot.slane %v744_v52, 2  ;;  %v765_v63 = vmax.f32 %v763_v50, %v764_v55  ;;  %v771_v0 = vrot.slane %v770_v56, 4  ;;  %v778_v1 = vrot.slane %v777_v57, 4 }
  0xa2   :  { %v739_v62 = vmax.f32 %v737_v47, %v738_v17  ;;  %v733_v2 = vrot.slane %v732_v58, 1  ;;  %v752_v4 = vrot.slane %v751_v60, 2  ;;  %v759_v6 = vrot.slane %v758_v61, 2 }
  0xa3   :  { %v746_v3 = vmax.f32 %v744_v52, %v745_v59  ;;  %v766_v8 = vrot.slane %v765_v63, 2  ;;  %v772_v9 = vmax.f32 %v770_v56, %v771_v0  ;;  %v779_v10 = vmax.f32 %v777_v57, %v778_v1 }
  0xa4   :  { %v740_v7 = vrot.slane %v739_v62, 1  ;;  %v734_v11 = vmax.f32 %v732_v58, %v733_v2  ;;  %v753_v14 = vmax.f32 %v751_v60, %v752_v4  ;;  %v760_v18 = vmax.f32 %v758_v61, %v759_v6 }
  0xa5   :  { %v747_v12 = vrot.slane %v746_v3, 1  ;;  %v767_v20 = vmax.f32 %v765_v63, %v766_v8  ;;  %v773_v21 = vrot.slane %v772_v9, 2  ;;  %v780_v22 = vrot.slane %v779_v10, 2 }
  0xa6   :  { %v741_v19 = vmax.f32 %v739_v62, %v740_v7  ;;  %v754_v26 = vrot.slane %v753_v14, 1  ;;  %v761_v27 = vrot.slane %v760_v18, 1 }
  0xa7   :  { %v748_v23 = vmax.f32 %v746_v3, %v747_v12  ;;  %v768_v28 = vrot.slane %v767_v20, 1  ;;  %v774_v29 = vmax.f32 %v772_v9, %v773_v21  ;;  %v781_v30 = vmax.f32 %v779_v10, %v780_v22 }
  0xa8   :  { %v953_v31 = vsel %vm904_vm1, %v741_v19, %v734_v11  ;;  %v755_v32 = vmax.f32 %v753_v14, %v754_v26  ;;  %v762_v33 = vmax.f32 %v760_v18, %v761_v27 }
  0xa9   :  { %v954_v13 = vsel %vm906_vm2, %v748_v23, %v953_v31  ;;  %v769_v16 = vmax.f32 %v767_v20, %v768_v28  ;;  %v775_v34 = vrot.slane %v774_v29, 1  ;;  %v782_v35 = vrot.slane %v781_v30, 1 }
  0xaa   :  { %v955_v36 = vsel %vm908_vm3, %v755_v32, %v954_v13 }
  0xab   :  { %v776_v37 = vmax.f32 %v774_v29, %v775_v34  ;;  %v783_v38 = vmax.f32 %v781_v30, %v782_v35  ;;  %v956_v39 = vsel %vm910_vm4, %v762_v33, %v955_v36 }
  0xac   :  { %v957_v40 = vsel %vm912_vm5, %v769_v16, %v956_v39 }
  0xad   :  { %v958_v41 = vsel %vm914_vm6, %v776_v37, %v957_v40 }
  0xae   :  { %v959_v42 = vsel %vm916_vm7, %v783_v38, %v958_v41 }
  0xaf   :  { %1167 = vxpose.xlu0.b32.start.end [1/1] (short) (narrow) %v959_v42, 16 }
  0xb2   :  { %v1055_v15 = vpop.trf.xlu1 }
  0xb3   :  { %v1315_v25 = vcombine.high %v1055_v15, %v1055_v15  ;;  %v1322_v43 = vrot.slane %v1055_v15, %v2552_v5 }
  0xb5   :  { %v1329_v44 = vrot.slane %v1315_v25, %v2552_v5  ;;  %v1330_v24 = vcombine.high %v1322_v43, %v1322_v43  ;;  %v1696_v45 = vsel %vm1583_vm8, %v1322_v43, -inf }
  0xb6   :  { %v1697_v46 = vrot.slane %v1696_v45, 4  ;;  %v1056_v47 = vpop.trf.xlu1 }
  0xb7   :  { %v1331_v48 = vcombine.high %v1329_v44, %v1329_v44  ;;  %v1703_v49 = vsel %vm1583_vm8, %v1330_v24, -inf  ;;  %v1710_v50 = vsel %vm1583_vm8, %v1329_v44, -inf  ;;  %v1332_v51 = vcombine.high %v1056_v47, %v1056_v47 }
  0xb8   :  { %v1698_v52 = vmax.f32 %v1696_v45, %v1697_v46  ;;  %v1704_v53 = vrot.slane %v1703_v49, 4  ;;  %v1711_v54 = vrot.slane %v1710_v50, 4  ;;  %v1339_v17 = vrot.slane %v1056_v47, %v2552_v5 }
  0xb9   :  { %v1717_v55 = vsel %vm1583_vm8, %v1331_v48, -inf  ;;  %v1346_v56 = vrot.slane %v1332_v51, %v2552_v5 }
  0xba   :  { %v1699_v57 = vrot.slane %v1698_v52, 2  ;;  %v1705_v58 = vmax.f32 %v1703_v49, %v1704_v53  ;;  %v1712_v59 = vmax.f32 %v1710_v50, %v1711_v54  ;;  %v1718_v60 = vrot.slane %v1717_v55, 4 }
  0xbb   :  { %v1347_v61 = vcombine.high %v1339_v17, %v1339_v17  ;;  %v1348_v62 = vcombine.high %v1346_v56, %v1346_v56  ;;  %v1724_v63 = vsel %vm1583_vm8, %v1339_v17, -inf  ;;  %v1738_v0 = vsel %vm1583_vm8, %v1346_v56, -inf }
  0xbc   :  { %v1700_v1 = vmax.f32 %v1698_v52, %v1699_v57  ;;  %v1706_v2 = vrot.slane %v1705_v58, 2  ;;  %v1713_v3 = vrot.slane %v1712_v59, 2  ;;  %v1719_v4 = vmax.f32 %v1717_v55, %v1718_v60 }
  0xbd   :  { %v1725_v6 = vrot.slane %v1724_v63, 4  ;;  %v1731_v7 = vsel %vm1583_vm8, %v1347_v61, -inf  ;;  %v1739_v8 = vrot.slane %v1738_v0, 4  ;;  %v1745_v9 = vsel %vm1583_vm8, %v1348_v62, -inf }
  0xbe   :  { %v1701_v10 = vrot.slane %v1700_v1, 1  ;;  %v1707_v11 = vmax.f32 %v1705_v58, %v1706_v2  ;;  %v1714_v12 = vmax.f32 %v1712_v59, %v1713_v3  ;;  %v1720_v14 = vrot.slane %v1719_v4, 2 }
  0xbf   :  { %v1726_v18 = vmax.f32 %v1724_v63, %v1725_v6  ;;  %v1732_v19 = vrot.slane %v1731_v7, 4  ;;  %v1740_v20 = vmax.f32 %v1738_v0, %v1739_v8  ;;  %v1746_v21 = vrot.slane %v1745_v9, 4 }
  0xc0   :  { %v1708_v22 = vrot.slane %v1707_v11, 1  ;;  %v1715_v23 = vrot.slane %v1714_v12, 1  ;;  %v1721_v26 = vmax.f32 %v1719_v4, %v1720_v14  ;;  %v1702_v31 = vmax.f32 %v1700_v1, %v1701_v10 }
  0xc1   :  { %v1727_v27 = vrot.slane %v1726_v18, 2  ;;  %v1733_v28 = vmax.f32 %v1731_v7, %v1732_v19  ;;  %v1741_v29 = vrot.slane %v1740_v20, 2  ;;  %v1747_v30 = vmax.f32 %v1745_v9, %v1746_v21 }
  0xc2   :  { %v1709_v32 = vmax.f32 %v1707_v11, %v1708_v22  ;;  %v1716_v33 = vmax.f32 %v1714_v12, %v1715_v23  ;;  %v1722_v13 = vrot.slane %v1721_v26, 1 }
  0xc3   :  { %v991_v16 = vpop.trf.xlu0  ;;  %v1728_v34 = vmax.f32 %v1726_v18, %v1727_v27  ;;  %v1734_v35 = vrot.slane %v1733_v28, 2  ;;  %v1742_v36 = vmax.f32 %v1740_v20, %v1741_v29  ;;  %v1748_v37 = vrot.slane %v1747_v30, 2 }
  0xc4   :  { %v2110_v38 = vsel %vm904_vm1, %v1709_v32, %v1702_v31  ;;  %v1247_v39 = vcombine.high %v991_v16, %v991_v16  ;;  %v1254_v40 = vrot.slane %v991_v16, %v2552_v5  ;;  %v2746_v41 = vmax.f32 %v1721_v26, %v1722_v13 }
  0xc5   :  { %v1729_v42 = vrot.slane %v1728_v34, 1  ;;  %v1735_v15 = vmax.f32 %v1733_v28, %v1734_v35  ;;  %v1743_v25 = vrot.slane %v1742_v36, 1  ;;  %v1749_v45 = vmax.f32 %v1747_v30, %v1748_v37 }
  0xc6   :  { %v1261_v43 = vrot.slane %v1247_v39, %v2552_v5  ;;  %v1262_v44 = vcombine.high %v1254_v40, %v1254_v40  ;;  %v1584_v24 = vsel %vm1583_vm8, %v1254_v40, -inf  ;;  %v2111_v50 = vsel %vm906_vm2, %v1716_v33, %v2110_v38 }
  0xc7   :  { %v1585_v46 = vrot.slane %v1584_v24, 4  ;;  %v2750_v47 = vmax.f32 %v1728_v34, %v1729_v42  ;;  %v1736_v48 = vrot.slane %v1735_v15, 1  ;;  %v992_v49 = vpop.trf.xlu0  ;;  %v2760_v61 = vmax.f32 %v1742_v36, %v1743_v25 }
  0xc8   :  { %v1263_v51 = vcombine.high %v1261_v43, %v1261_v43  ;;  %v1591_v52 = vsel %vm1583_vm8, %v1262_v44, -inf  ;;  %v1598_v53 = vsel %vm1583_vm8, %v1261_v43, -inf  ;;  %v1264_v54 = vcombine.high %v992_v49, %v992_v49 }
  0xc9   :  { %v1586_v17 = vmax.f32 %v1584_v24, %v1585_v46  ;;  %v1592_v55 = vrot.slane %v1591_v52, 4  ;;  %v1599_v56 = vrot.slane %v1598_v53, 4  ;;  %v1271_v57 = vrot.slane %v992_v49, %v2552_v5 }
  0xca   :  { %v1605_v58 = vsel %vm1583_vm8, %v1263_v51, -inf  ;;  %v1278_v59 = vrot.slane %v1264_v54, %v2552_v5  ;;  %v2758_v60 = vmax.f32 %v1735_v15, %v1736_v48  ;;  %v1750_v32 = vrot.slane %v1749_v45, 1 }
  0xcb   :  { %v1587_v62 = vrot.slane %v1586_v17, 2  ;;  %v1593_v63 = vmax.f32 %v1591_v52, %v1592_v55  ;;  %v1600_v0 = vmax.f32 %v1598_v53, %v1599_v56  ;;  %v1606_v1 = vrot.slane %v1605_v58, 4 }
  0xcc   :  { %v1279_v2 = vcombine.high %v1271_v57, %v1271_v57  ;;  %v1280_v3 = vcombine.high %v1278_v59, %v1278_v59  ;;  %v1612_v4 = vsel %vm1583_vm8, %v1271_v57, -inf  ;;  %v1626_v6 = vsel %vm1583_vm8, %v1278_v59, -inf }
  0xcd   :  { %v1588_v7 = vmax.f32 %v1586_v17, %v1587_v62  ;;  %v1594_v8 = vrot.slane %v1593_v63, 2  ;;  %v1601_v9 = vrot.slane %v1600_v0, 2  ;;  %v1607_v10 = vmax.f32 %v1605_v58, %v1606_v1 }
  0xce   :  { %v1613_v11 = vrot.slane %v1612_v4, 4  ;;  %v1619_v12 = vsel %vm1583_vm8, %v1279_v2, -inf  ;;  %v1627_v14 = vrot.slane %v1626_v6, 4  ;;  %v1633_v18 = vsel %vm1583_vm8, %v1280_v3, -inf }
  0xcf   :  { %v1589_v19 = vrot.slane %v1588_v7, 1  ;;  %v1595_v20 = vmax.f32 %v1593_v63, %v1594_v8  ;;  %v1602_v21 = vmax.f32 %v1600_v0, %v1601_v9  ;;  %v1608_v22 = vrot.slane %v1607_v10, 2 }
  0xd0   :  { %v1614_v23 = vmax.f32 %v1612_v4, %v1613_v11  ;;  %v1620_v26 = vrot.slane %v1619_v12, 4  ;;  %v1628_v27 = vmax.f32 %v1626_v6, %v1627_v14  ;;  %v1634_v28 = vrot.slane %v1633_v18, 4 }
  0xd1   :  { %v1596_v29 = vrot.slane %v1595_v20, 1  ;;  %v1603_v30 = vrot.slane %v1602_v21, 1  ;;  %v1609_v31 = vmax.f32 %v1607_v10, %v1608_v22  ;;  %v1590_v35 = vmax.f32 %v1588_v7, %v1589_v19 }
  0xd2   :  { %v1615_v33 = vrot.slane %v1614_v23, 2  ;;  %v1621_v13 = vmax.f32 %v1619_v12, %v1620_v26  ;;  %v1629_v16 = vrot.slane %v1628_v27, 2  ;;  %v1635_v34 = vmax.f32 %v1633_v18, %v1634_v28 }
  0xd3   :  { %v1597_v36 = vmax.f32 %v1595_v20, %v1596_v29  ;;  %v1604_v37 = vmax.f32 %v1602_v21, %v1603_v30  ;;  %v1610_v38 = vrot.slane %v1609_v31, 1  ;;  %v2767_v24 = vmax.f32 %v1749_v45, %v1750_v32 }
  0xd4   :  { %v1616_v39 = vmax.f32 %v1614_v23, %v1615_v33  ;;  %v1622_v40 = vrot.slane %v1621_v13, 2  ;;  %v1630_v42 = vmax.f32 %v1628_v27, %v1629_v16  ;;  %v1636_v15 = vrot.slane %v1635_v34, 2  ;;  %v1087_v44 = vpop.trf.xlu1 }
  0xd5   :  { %v1611_v25 = vmax.f32 %v1609_v31, %v1610_v38  ;;  %v2096_v43 = vsel %vm904_vm1, %v1597_v36, %v1590_v35  ;;  %v2112_v46 = vsel %vm908_vm3, %v2746_v41, %v2111_v50  ;;  %v1349_v51 = vcombine.high %v1087_v44, %v1087_v44 }
  0xd6   :  { %v1617_v48 = vrot.slane %v1616_v39, 1  ;;  %v1623_v49 = vmax.f32 %v1621_v13, %v1622_v40  ;;  %v1356_v52 = vrot.slane %v1087_v44, %v2552_v5  ;;  %v1631_v53 = vrot.slane %v1630_v42, 1 }
  0xd7   :  { %v1637_v54 = vmax.f32 %v1635_v34, %v1636_v15  ;;  %v2097_v17 = vsel %vm906_vm2, %v1604_v37, %v2096_v43  ;;  %v2775_v55 = vsel %vm910_vm4, %v2750_v47, %v2112_v46  ;;  %v1363_v45 = vrot.slane %v1349_v51, %v2552_v5 }
  0xd8   :  { %v1618_v56 = vmax.f32 %v1616_v39, %v1617_v48  ;;  %v1624_v57 = vrot.slane %v1623_v49, 1  ;;  %v1364_v58 = vcombine.high %v1356_v52, %v1356_v52  ;;  %v1752_v41 = vsel %vm1583_vm8, %v1356_v52, -inf  ;;  %v1088_v50 = vpop.trf.xlu1 }
  0xd9   :  { %v1632_v59 = vmax.f32 %v1630_v42, %v1631_v53  ;;  %v1638_v62 = vrot.slane %v1637_v54, 1  ;;  %v2098_v63 = vsel %vm908_vm3, %v1611_v25, %v2097_v17  ;;  %v1365_v0 = vcombine.high %v1363_v45, %v1363_v45 }
  0xda   :  { %v1753_v1 = vrot.slane %v1752_v41, 4  ;;  %v1759_v2 = vsel %vm1583_vm8, %v1364_v58, -inf  ;;  %v1766_v3 = vsel %vm1583_vm8, %v1363_v45, -inf  ;;  %v1366_v6 = vcombine.high %v1088_v50, %v1088_v50 }
  0xdb   :  { %v1760_v47 = vrot.slane %v1759_v2, 4  ;;  %v1767_v4 = vrot.slane %v1766_v3, 4  ;;  %v1373_v7 = vrot.slane %v1088_v50, %v2552_v5  ;;  %v1773_v9 = vsel %vm1583_vm8, %v1365_v0, -inf }
  0xdc   :  { %v1754_v8 = vmax.f32 %v1752_v41, %v1753_v1  ;;  %v1625_v10 = vmax.f32 %v1623_v49, %v1624_v57  ;;  %v1639_v11 = vmax.f32 %v1637_v54, %v1638_v62  ;;  %v1774_v18 = vrot.slane %v1773_v9, 4 }
  0xdd   :  { %v1761_v12 = vmax.f32 %v1759_v2, %v1760_v47  ;;  %v1768_v14 = vmax.f32 %v1766_v3, %v1767_v4  ;;  %v1380_v19 = vrot.slane %v1366_v6, %v2552_v5  ;;  %v1381_v21 = vcombine.high %v1373_v7, %v1373_v7 }
  0xde   :  { %v1755_v20 = vrot.slane %v1754_v8, 2  ;;  %v1780_v22 = vsel %vm1583_vm8, %v1373_v7, -inf  ;;  %v2099_v23 = vsel %vm910_vm4, %v1618_v56, %v2098_v63  ;;  %v1775_v28 = vmax.f32 %v1773_v9, %v1774_v18 }
  0xdf   :  { %v1762_v26 = vrot.slane %v1761_v12, 2  ;;  %v1769_v27 = vrot.slane %v1768_v14, 2  ;;  %v1382_v29 = vcombine.high %v1380_v19, %v1380_v19  ;;  %v1781_v31 = vrot.slane %v1780_v22, 4 }
  0xe0   :  { %v1756_v30 = vmax.f32 %v1754_v8, %v1755_v20  ;;  %v1787_v32 = vsel %vm1583_vm8, %v1381_v21, -inf  ;;  %v1794_v33 = vsel %vm1583_vm8, %v1380_v19, -inf  ;;  %v1776_v34 = vrot.slane %v1775_v28, 2 }
  0xe1   :  { %v1763_v13 = vmax.f32 %v1761_v12, %v1762_v26  ;;  %v1770_v16 = vmax.f32 %v1768_v14, %v1769_v27  ;;  %v1788_v35 = vrot.slane %v1787_v32, 4  ;;  %v1782_v37 = vmax.f32 %v1780_v22, %v1781_v31 }
  0xe2   :  { %v1757_v36 = vrot.slane %v1756_v30, 1  ;;  %v1795_v38 = vrot.slane %v1794_v33, 4  ;;  %v1801_v39 = vsel %vm1583_vm8, %v1382_v29, -inf  ;;  %v1777_v15 = vmax.f32 %v1775_v28, %v1776_v34 }
  0xe3   :  { %v1764_v40 = vrot.slane %v1763_v13, 1  ;;  %v1771_v42 = vrot.slane %v1770_v16, 1  ;;  %v1789_v25 = vmax.f32 %v1787_v32, %v1788_v35  ;;  %v1783_v44 = vrot.slane %v1782_v37, 2 }
  0xe4   :  { %v1758_v43 = vmax.f32 %v1756_v30, %v1757_v36  ;;  %v1796_v46 = vmax.f32 %v1794_v33, %v1795_v38  ;;  %v1802_v48 = vrot.slane %v1801_v39, 4  ;;  %v1778_v52 = vrot.slane %v1777_v15, 1 }
  0xe5   :  { %v1765_v49 = vmax.f32 %v1763_v13, %v1764_v40  ;;  %v2790_v51 = vmax.f32 %v1770_v16, %v1771_v42  ;;  %v1790_v53 = vrot.slane %v1789_v25, 2  ;;  %v1784_v54 = vmax.f32 %v1782_v37, %v1783_v44 }
  0xe6   :  { %v1797_v17 = vrot.slane %v1796_v46, 2  ;;  %v2792_v56 = vmax.f32 %v1801_v39, %v1802_v48  ;;  %v2100_v57 = vsel %vm912_vm5, %v1625_v10, %v2099_v23  ;;  %v2795_v45 = vmax.f32 %v1777_v15, %v1778_v52  ;;  %v1023_v41 = vpop.trf.xlu0 }
  0xe7   :  { %v2798_v58 = vsel %vm904_vm1, %v1765_v49, %v1758_v43  ;;  %v1791_v50 = vmax.f32 %v1789_v25, %v1790_v53  ;;  %v2101_v62 = vsel %vm914_vm6, %v1632_v59, %v2100_v57  ;;  %v1281_v63 = vcombine.high %v1023_v41, %v1023_v41 }
  0xe8   :  { %v1288_v0 = vrot.slane %v1023_v41, %v2552_v5  ;;  %v1785_v1 = vrot.slane %v1784_v54, 1  ;;  %v1798_v2 = vmax.f32 %v1796_v46, %v1797_v17  ;;  %v2102_v47 = vsel %vm916_vm7, %v1639_v11, %v2101_v62 }
  0xe9   :  { %v1792_v3 = vrot.slane %v1791_v50, 1  ;;  %v2114_v4 = vsel %vm912_vm5, %v2758_v60, %v2775_v55  ;;  %v1804_v6 = vrot.slane %v2792_v56, 2  ;;  %v1295_v7 = vrot.slane %v1281_v63, %v2552_v5  ;;  %2160 = vxpose.xlu0.b32.start.end [1/1] (short) (narrow) %v2102_v47, 8 }
  0xea   :  { %v1296_v8 = vcombine.high %v1288_v0, %v1288_v0  ;;  %v1640_v9 = vsel %vm1583_vm8, %v1288_v0, -inf  ;;  %v2809_v59 = vmax.f32 %v1784_v54, %v1785_v1  ;;  %v1024_v12 = vpop.trf.xlu0  ;;  %v2115_v14 = vsel %vm914_vm6, %v2760_v61, %v2114_v4 }
  0xeb   :  { %v1641_v10 = vrot.slane %v1640_v9, 4  ;;  %v2813_v11 = vmax.f32 %v1791_v50, %v1792_v3  ;;  %v1799_v18 = vrot.slane %v1798_v2, 1  ;;  %v1297_v19 = vcombine.high %v1295_v7, %v1295_v7 }
  0xec   :  { %v1647_v60 = vsel %vm1583_vm8, %v1296_v8, -inf  ;;  %v1654_v55 = vsel %vm1583_vm8, %v1295_v7, -inf  ;;  %v1298_v20 = vcombine.high %v1024_v12, %v1024_v12  ;;  %v1305_v26 = vrot.slane %v1024_v12, %v2552_v5 }
  0xed   :  { %v1642_v21 = vmax.f32 %v1640_v9, %v1641_v10  ;;  %v1648_v22 = vrot.slane %v1647_v60, 4  ;;  %v1655_v23 = vrot.slane %v1654_v55, 4  ;;  %v1661_v27 = vsel %vm1583_vm8, %v1297_v19, -inf }
  0xee   :  { %v1312_v28 = vrot.slane %v1298_v20, %v2552_v5  ;;  %v2116_v61 = vsel %vm916_vm7, %v2767_v24, %v2115_v14  ;;  %v2822_v29 = vmax.f32 %v1798_v2, %v1799_v18  ;;  %v1662_v33 = vrot.slane %v1661_v27, 4 }
  0xef   :  { %v1643_v30 = vrot.slane %v1642_v21, 2  ;;  %v1649_v31 = vmax.f32 %v1647_v60, %v1648_v22  ;;  %v1656_v32 = vmax.f32 %v1654_v55, %v1655_v23  ;;  %2224 = vxpose.xlu0.b32.start.end [1/1] (short) (narrow) %v2116_v61, 8  ;;  %v1313_v13 = vcombine.high %v1305_v26, %v1305_v26 }
  0xf0   :  { %v1314_v16 = vcombine.high %v1312_v28, %v1312_v28  ;;  %v1668_v34 = vsel %vm1583_vm8, %v1305_v26, -inf  ;;  %v1682_v35 = vsel %vm1583_vm8, %v1312_v28, -inf  ;;  %v1663_v39 = vmax.f32 %v1661_v27, %v1662_v33 }
  0xf1   :  { %v1644_v36 = vmax.f32 %v1642_v21, %v1643_v30  ;;  %v1650_v37 = vrot.slane %v1649_v31, 2  ;;  %v1657_v38 = vrot.slane %v1656_v32, 2  ;;  %v1669_v40 = vrot.slane %v1668_v34, 4 }
  0xf2   :  { %v1675_v24 = vsel %vm1583_vm8, %v1313_v13, -inf  ;;  %v1683_v42 = vrot.slane %v1682_v35, 4  ;;  %v1689_v15 = vsel %vm1583_vm8, %v1314_v16, -inf  ;;  %v1664_v46 = vrot.slane %v1663_v39, 2 }
  0xf3   :  { %v1645_v25 = vrot.slane %v1644_v36, 1  ;;  %v1651_v43 = vmax.f32 %v1649_v31, %v1650_v37  ;;  %v1658_v44 = vmax.f32 %v1656_v32, %v1657_v38  ;;  %v1670_v48 = vmax.f32 %v1668_v34, %v1669_v40 }
  0xf4   :  { %v1676_v49 = vrot.slane %v1675_v24, 4  ;;  %v1684_v52 = vmax.f32 %v1682_v35, %v1683_v42  ;;  %v1690_v53 = vrot.slane %v1689_v15, 4  ;;  %v1665_v41 = vmax.f32 %v1663_v39, %v1664_v46 }
  0xf5   :  { %v1646_v54 = vmax.f32 %v1644_v36, %v1645_v25  ;;  %v1652_v17 = vrot.slane %v1651_v43, 1  ;;  %v1659_v57 = vrot.slane %v1658_v44, 1  ;;  %v1671_v50 = vrot.slane %v1670_v48, 2 }
  0xf6   :  { %v1677_v62 = vmax.f32 %v1675_v24, %v1676_v49  ;;  %v1685_v63 = vrot.slane %v1684_v52, 2  ;;  %v1691_v0 = vmax.f32 %v1689_v15, %v1690_v53  ;;  %v1666_v3 = vrot.slane %v1665_v41, 1 }
  0xf7   :  { %v1653_v1 = vmax.f32 %v1651_v43, %v1652_v17  ;;  %v1660_v2 = vmax.f32 %v1658_v44, %v1659_v57  ;;  %v1805_v47 = vmax.f32 %v2792_v56, %v1804_v6  ;;  %v1672_v4 = vmax.f32 %v1670_v48, %v1671_v50 }
  0xf8   :  { %v1678_v7 = vrot.slane %v1677_v62, 2  ;;  %v1686_v8 = vmax.f32 %v1684_v52, %v1685_v63  ;;  %v1692_v9 = vrot.slane %v1691_v0, 2  ;;  %v1667_v10 = vmax.f32 %v1665_v41, %v1666_v3  ;;  %v1151_v14 = vpop.trf.xlu1 }
  0xf9   :  { %v2103_v12 = vsel %vm904_vm1, %v1653_v1, %v1646_v54  ;;  %v1806_v18 = vrot.slane %v1805_v47, 1  ;;  %v2833_v19 = vsel %vm906_vm2, %v2790_v51, %v2798_v58  ;;  %v1673_v60 = vrot.slane %v1672_v4, 1 }
  0xfa   :  { %v1679_v55 = vmax.f32 %v1677_v62, %v1678_v7  ;;  %v1417_v20 = vcombine.high %v1151_v14, %v1151_v14  ;;  %v1424_v21 = vrot.slane %v1151_v14, %v2552_v5  ;;  %v1687_v56 = vrot.slane %v1686_v8, 1 }
  0xfb   :  { %v1693_v6 = vmax.f32 %v1691_v0, %v1692_v9  ;;  %v2104_v22 = vsel %vm906_vm2, %v1660_v2, %v2103_v12  ;;  %v2837_v23 = vmax.f32 %v1805_v47, %v1806_v18  ;;  %v1674_v26 = vmax.f32 %v1672_v4, %v1673_v60 }
  0xfc   :  { %v1680_v27 = vrot.slane %v1679_v55, 1  ;;  %v1431_v28 = vrot.slane %v1417_v20, %v2552_v5  ;;  %v1432_v61 = vcombine.high %v1424_v21, %v1424_v21  ;;  %v1864_v30 = vsel %vm1583_vm8, %v1424_v21, -inf  ;;  %v1152_v51 = vpop.trf.xlu1 }
  0xfd   :  { %v1688_v58 = vmax.f32 %v1686_v8, %v1687_v56  ;;  %v1694_v31 = vrot.slane %v1693_v6, 1  ;;  %v2105_v32 = vsel %vm908_vm3, %v1667_v10, %v2104_v22  ;;  %v1865_v13 = vrot.slane %v1864_v30, 4 }
  0xfe   :  { %v1433_v33 = vcombine.high %v1431_v28, %v1431_v28  ;;  %v1871_v16 = vsel %vm1583_vm8, %v1432_v61, -inf  ;;  %v1878_v34 = vsel %vm1583_vm8, %v1431_v28, -inf  ;;  %v1434_v37 = vcombine.high %v1152_v51, %v1152_v51 }
  0xff   :  { %v1872_v35 = vrot.slane %v1871_v16, 4  ;;  %v1879_v36 = vrot.slane %v1878_v34, 4  ;;  %v1441_v38 = vrot.slane %v1152_v51, %v2552_v5  ;;  %v1866_v39 = vmax.f32 %v1864_v30, %v1865_v13 }
 0x100   :  { %v1885_v40 = vsel %vm1583_vm8, %v1433_v33, -inf  ;;  %v1681_v24 = vmax.f32 %v1679_v55, %v1680_v27  ;;  %v1695_v42 = vmax.f32 %v1693_v6, %v1694_v31  ;;  %v1448_v44 = vrot.slane %v1434_v37, %v2552_v5 }
 0x101   :  { %v1873_v15 = vmax.f32 %v1871_v16, %v1872_v35  ;;  %v1880_v25 = vmax.f32 %v1878_v34, %v1879_v36  ;;  %v1886_v43 = vrot.slane %v1885_v40, 4  ;;  %v1867_v46 = vrot.slane %v1866_v39, 2 }
 0x102   :  { %v1449_v48 = vcombine.high %v1441_v38, %v1441_v38  ;;  %v1892_v49 = vsel %vm1583_vm8, %v1441_v38, -inf  ;;  %v2106_v52 = vsel %vm910_vm4, %v1674_v26, %v2105_v32  ;;  %v1450_v57 = vcombine.high %v1448_v44, %v1448_v44 }
 0x103   :  { %v1874_v53 = vrot.slane %v1873_v15, 2  ;;  %v1881_v54 = vrot.slane %v1880_v25, 2  ;;  %v1887_v17 = vmax.f32 %v1885_v40, %v1886_v43  ;;  %v1868_v41 = vmax.f32 %v1866_v39, %v1867_v46 }
 0x104   :  { %v1893_v50 = vrot.slane %v1892_v49, 4  ;;  %v1899_v62 = vsel %vm1583_vm8, %v1449_v48, -inf  ;;  %v1906_v63 = vsel %vm1583_vm8, %v1448_v44, -inf  ;;  %v1913_v8 = vsel %vm1583_vm8, %v1450_v57, -inf }
 0x105   :  { %v1875_v0 = vmax.f32 %v1873_v15, %v1874_v53  ;;  %v1882_v1 = vmax.f32 %v1880_v25, %v1881_v54  ;;  %v1888_v2 = vrot.slane %v1887_v17, 2  ;;  %v1900_v3 = vrot.slane %v1899_v62, 4 }
 0x106   :  { %v1869_v47 = vrot.slane %v1868_v41, 1  ;;  %v1894_v4 = vmax.f32 %v1892_v49, %v1893_v50  ;;  %v1907_v7 = vrot.slane %v1906_v63, 4  ;;  %v1914_v20 = vrot.slane %v1913_v8, 4 }
 0x107   :  { %v1876_v9 = vrot.slane %v1875_v0, 1  ;;  %v1883_v10 = vrot.slane %v1882_v1, 1  ;;  %v1889_v12 = vmax.f32 %v1887_v17, %v1888_v2  ;;  %v1901_v14 = vmax.f32 %v1899_v62, %v1900_v3 }
 0x108   :  { %v1870_v18 = vmax.f32 %v1868_v41, %v1869_v47  ;;  %v1895_v60 = vrot.slane %v1894_v4, 2  ;;  %v1908_v55 = vmax.f32 %v1906_v63, %v1907_v7  ;;  %v1915_v28 = vmax.f32 %v1913_v8, %v1914_v20 }
 0x109   :  { %v1877_v21 = vmax.f32 %v1875_v0, %v1876_v9  ;;  %v1884_v56 = vmax.f32 %v1882_v1, %v1883_v10  ;;  %v1890_v6 = vrot.slane %v1889_v12, 1  ;;  %v1902_v22 = vrot.slane %v1901_v14, 2 }
 0x10a   :  { %v1896_v26 = vmax.f32 %v1894_v4, %v1895_v60  ;;  %v1909_v27 = vrot.slane %v1908_v55, 2  ;;  %v2107_v61 = vsel %vm912_vm5, %v1681_v24, %v2106_v52  ;;  %v2119_v35 = vsel %vm908_vm3, %v2795_v45, %v2833_v19 }
 0x10b   :  { %v2853_v30 = vmax.f32 %v1889_v12, %v1890_v6  ;;  %v2131_v51 = vsel %vm904_vm1, %v1877_v21, %v1870_v18  ;;  %v1903_v31 = vmax.f32 %v1901_v14, %v1902_v22  ;;  %v2108_v32 = vsel %vm914_vm6, %v1688_v58, %v2107_v61  ;;  %v1119_v33 = vpop.trf.xlu0 }
 0x10c   :  { %v1897_v13 = vrot.slane %v1896_v26, 1  ;;  %v1910_v16 = vmax.f32 %v1908_v55, %v1909_v27  ;;  %v2109_v34 = vsel %vm916_vm7, %v1695_v42, %v2108_v32  ;;  %v1383_v36 = vcombine.high %v1119_v33, %v1119_v33 }
 0x10d   :  { %v1390_v37 = vrot.slane %v1119_v33, %v2552_v5  ;;  %v1904_v38 = vrot.slane %v1903_v31, 1  ;;  %2192 = vxpose.xlu1.b32.start.end [1/1] (short) (narrow) %v2109_v34, 8  ;;  %v2120_v39 = vsel %vm910_vm4, %v2809_v59, %v2119_v35  ;;  %v1916_v15 = vrot.slane %v1915_v28, 2 }
 0x10e   :  { %v2864_v40 = vmax.f32 %v1896_v26, %v1897_v13  ;;  %v2121_v58 = vsel %vm912_vm5, %v2813_v11, %v2120_v39  ;;  %v1911_v24 = vrot.slane %v1910_v16, 1  ;;  %v1397_v42 = vrot.slane %v1383_v36, %v2552_v5 }
 0x10f   :  { %v1398_v25 = vcombine.high %v1390_v37, %v1390_v37  ;;  %v1808_v45 = vsel %vm1583_vm8, %v1390_v37, -inf  ;;  %v2122_v19 = vsel %vm914_vm6, %v2822_v29, %v2121_v58  ;;  %v1120_v44 = vpop.trf.xlu0  ;;  %v2874_v46 = vmax.f32 %v1903_v31, %v1904_v38 }
 0x110   :  { %v1809_v43 = vrot.slane %v1808_v45, 4  ;;  %v2123_v59 = vsel %vm916_vm7, %v2837_v23, %v2122_v19  ;;  %v2876_v48 = vmax.f32 %v1910_v16, %v1911_v24  ;;  %v1399_v11 = vcombine.high %v1397_v42, %v1397_v42 }
 0x111   :  { %v1815_v49 = vsel %vm1583_vm8, %v1398_v25, -inf  ;;  %v1822_v52 = vsel %vm1583_vm8, %v1397_v42, -inf  ;;  %v1400_v53 = vcombine.high %v1120_v44, %v1120_v44  ;;  %2256 = vxpose.xlu1.b32.start.end [1/1] (short) (narrow) %v2123_v59, 8  ;;  %v1407_v29 = vrot.slane %v1120_v44, %v2552_v5 }
 0x112   :  { %v1810_v54 = vmax.f32 %v1808_v45, %v1809_v43  ;;  %v1816_v17 = vrot.slane %v1815_v49, 4  ;;  %v1823_v57 = vrot.slane %v1822_v52, 4  ;;  %v1829_v41 = vsel %vm1583_vm8, %v1399_v11, -inf }
 0x113   :  { %v1414_v23 = vrot.slane %v1400_v53, %v2552_v5  ;;  %v1917_v50 = vmax.f32 %v1915_v28, %v1916_v15  ;;  %v2132_v62 = vsel %vm906_vm2, %v1884_v56, %v2131_v51  ;;  %v1830_v2 = vrot.slane %v1829_v41, 4 }
 0x114   :  { %v1811_v63 = vrot.slane %v1810_v54, 2  ;;  %v1817_v0 = vmax.f32 %v1815_v49, %v1816_v17  ;;  %v1824_v1 = vmax.f32 %v1822_v52, %v1823_v57  ;;  %v1415_v3 = vcombine.high %v1407_v29, %v1407_v29 }
 0x115   :  { %v1416_v47 = vcombine.high %v1414_v23, %v1414_v23  ;;  %v1836_v4 = vsel %vm1583_vm8, %v1407_v29, -inf  ;;  %v1850_v7 = vsel %vm1583_vm8, %v1414_v23, -inf  ;;  %v1831_v12 = vmax.f32 %v1829_v41, %v1830_v2 }
 0x116   :  { %v1812_v8 = vmax.f32 %v1810_v54, %v1811_v63  ;;  %v1818_v9 = vrot.slane %v1817_v0, 2  ;;  %v1825_v10 = vrot.slane %v1824_v1, 2  ;;  %v1837_v14 = vrot.slane %v1836_v4, 4 }
 0x117   :  { %v1843_v18 = vsel %vm1583_vm8, %v1415_v3, -inf  ;;  %v1851_v60 = vrot.slane %v1850_v7, 4  ;;  %v1857_v55 = vsel %vm1583_vm8, %v1416_v47, -inf  ;;  %v1832_v6 = vrot.slane %v1831_v12, 2 }
 0x118   :  { %v1813_v20 = vrot.slane %v1812_v8, 1  ;;  %v1819_v21 = vmax.f32 %v1817_v0, %v1818_v9  ;;  %v1826_v56 = vmax.f32 %v1824_v1, %v1825_v10  ;;  %v1838_v22 = vmax.f32 %v1836_v4, %v1837_v14 }
 0x119   :  { %v1844_v26 = vrot.slane %v1843_v18, 4  ;;  %v1852_v27 = vmax.f32 %v1850_v7, %v1851_v60  ;;  %v1858_v28 = vrot.slane %v1857_v55, 4  ;;  %v1833_v32 = vmax.f32 %v1831_v12, %v1832_v6 }
 0x11a   :  { %v1814_v61 = vmax.f32 %v1812_v8, %v1813_v20  ;;  %v1820_v51 = vrot.slane %v1819_v21, 1  ;;  %v1827_v31 = vrot.slane %v1826_v56, 1  ;;  %v1839_v33 = vrot.slane %v1838_v22, 2 }
 0x11b   :  { %v1845_v13 = vmax.f32 %v1843_v18, %v1844_v26  ;;  %v1853_v16 = vrot.slane %v1852_v27, 2  ;;  %v1859_v34 = vmax.f32 %v1857_v55, %v1858_v28  ;;  %v1834_v37 = vrot.slane %v1833_v32, 1 }
 0x11c   :  { %v1821_v35 = vmax.f32 %v1819_v21, %v1820_v51  ;;  %v1828_v36 = vmax.f32 %v1826_v56, %v1827_v31  ;;  %v1918_v38 = vrot.slane %v1917_v50, 1  ;;  %v1840_v39 = vmax.f32 %v1838_v22, %v1839_v33 }
 0x11d   :  { %v1846_v58 = vrot.slane %v1845_v13, 2  ;;  %v1854_v24 = vmax.f32 %v1852_v27, %v1853_v16  ;;  %v2133_v15 = vsel %vm908_vm3, %v2853_v30, %v2132_v62  ;;  %v2890_v42 = vmax.f32 %v1833_v32, %v1834_v37  ;;  %v1215_v45 = vpop.trf.xlu1 }
 0x11e   :  { %v2124_v25 = vsel %vm904_vm1, %v1821_v35, %v1814_v61  ;;  %v1919_v19 = vmax.f32 %v1917_v50, %v1918_v38  ;;  %v2134_v43 = vsel %vm910_vm4, %v2864_v40, %v2133_v15  ;;  %v1841_v44 = vrot.slane %v1840_v39, 1 }
 0x11f   :  { %v1847_v59 = vmax.f32 %v1845_v13, %v1846_v58  ;;  %v1485_v11 = vcombine.high %v1215_v45, %v1215_v45  ;;  %v1492_v49 = vrot.slane %v1215_v45, %v2552_v5  ;;  %v2135_v52 = vsel %vm912_vm5, %v2874_v46, %v2134_v43 }
 0x120   :  { %v1855_v53 = vrot.slane %v1854_v24, 1  ;;  %v1860_v54 = vrot.slane %v1859_v34, 2  ;;  %v2899_v30 = vsel %vm906_vm2, %v1828_v36, %v2124_v25  ;;  %v2901_v17 = vmax.f32 %v1840_v39, %v1841_v44 }
 0x121   :  { %v1848_v57 = vrot.slane %v1847_v59, 1  ;;  %v1499_v29 = vrot.slane %v1485_v11, %v2552_v5  ;;  %v1500_v41 = vcombine.high %v1492_v49, %v1492_v49  ;;  %v1976_v40 = vsel %vm1583_vm8, %v1492_v49, -inf  ;;  %v1216_v23 = vpop.trf.xlu1 }
 0x122   :  { %v2136_v50 = vsel %vm914_vm6, %v2876_v48, %v2135_v52  ;;  %v2907_v62 = vmax.f32 %v1854_v24, %v1855_v53  ;;  %v1861_v46 = vmax.f32 %v1859_v34, %v1860_v54  ;;  %v1977_v0 = vrot.slane %v1976_v40, 4 }
 0x123   :  { %v1501_v63 = vcombine.high %v1499_v29, %v1499_v29  ;;  %v1983_v1 = vsel %vm1583_vm8, %v1500_v41, -inf  ;;  %v1990_v2 = vsel %vm1583_vm8, %v1499_v29, -inf  ;;  %v1502_v4 = vcombine.high %v1216_v23, %v1216_v23 }
 0x124   :  { %v1984_v3 = vrot.slane %v1983_v1, 4  ;;  %v1991_v47 = vrot.slane %v1990_v2, 4  ;;  %v1509_v7 = vrot.slane %v1216_v23, %v2552_v5  ;;  %v1978_v8 = vmax.f32 %v1976_v40, %v1977_v0 }
 0x125   :  { %v1997_v9 = vsel %vm1583_vm8, %v1501_v63, -inf  ;;  %v2137_v10 = vsel %vm916_vm7, %v1919_v19, %v2136_v50  ;;  %v1849_v48 = vmax.f32 %v1847_v59, %v1848_v57  ;;  %v1516_v60 = vrot.slane %v1502_v4, %v2552_v5 }
 0x126   :  { %v1985_v12 = vmax.f32 %v1983_v1, %v1984_v3  ;;  %v1992_v14 = vmax.f32 %v1990_v2, %v1991_v47  ;;  %v1998_v18 = vrot.slane %v1997_v9, 4  ;;  %2320 = vxpose.xlu1.b32.start.end [1/1] (short) (narrow) %v2137_v10, 8  ;;  %v1979_v55 = vrot.slane %v1978_v8, 2 }
 0x127   :  { %v1517_v20 = vcombine.high %v1509_v7, %v1509_v7  ;;  %v2004_v21 = vsel %vm1583_vm8, %v1509_v7, -inf  ;;  %v1862_v56 = vrot.slane %v1861_v46, 1  ;;  %v1518_v27 = vcombine.high %v1516_v60, %v1516_v60 }
 0x128   :  { %v1986_v6 = vrot.slane %v1985_v12, 2  ;;  %v1993_v22 = vrot.slane %v1992_v14, 2  ;;  %v1999_v26 = vmax.f32 %v1997_v9, %v1998_v18  ;;  %v1980_v28 = vmax.f32 %v1978_v8, %v1979_v55 }
 0x129   :  { %v2005_v61 = vrot.slane %v2004_v21, 4  ;;  %v2011_v51 = vsel %vm1583_vm8, %v1517_v20, -inf  ;;  %v2018_v31 = vsel %vm1583_vm8, %v1516_v60, -inf  ;;  %v2025_v37 = vsel %vm1583_vm8, %v1518_v27, -inf }
 0x12a   :  { %v1987_v32 = vmax.f32 %v1985_v12, %v1986_v6  ;;  %v1994_v33 = vmax.f32 %v1992_v14, %v1993_v22  ;;  %v2000_v13 = vrot.slane %v1999_v26, 2  ;;  %v2012_v16 = vrot.slane %v2011_v51, 4 }
 0x12b   :  { %v1981_v34 = vrot.slane %v1980_v28, 1  ;;  %v2006_v35 = vmax.f32 %v2004_v21, %v2005_v61  ;;  %v2019_v36 = vrot.slane %v2018_v31, 4  ;;  %v2026_v19 = vrot.slane %v2025_v37, 4 }
 0x12c   :  { %v1988_v38 = vrot.slane %v1987_v32, 1  ;;  %v1995_v39 = vrot.slane %v1994_v33, 1  ;;  %v2001_v58 = vmax.f32 %v1999_v26, %v2000_v13  ;;  %v2013_v24 = vmax.f32 %v2011_v51, %v2012_v16 }
 0x12d   :  { %v1982_v15 = vmax.f32 %v1980_v28, %v1981_v34  ;;  %v2007_v25 = vrot.slane %v2006_v35, 2  ;;  %v2020_v45 = vmax.f32 %v2018_v31, %v2019_v36  ;;  %v2919_v53 = vmax.f32 %v2025_v37, %v2026_v19 }
 0x12e   :  { %v1989_v43 = vmax.f32 %v1987_v32, %v1988_v38  ;;  %v1996_v44 = vmax.f32 %v1994_v33, %v1995_v39  ;;  %v2002_v59 = vrot.slane %v2001_v58, 1  ;;  %v2014_v11 = vrot.slane %v2013_v24, 2 }
 0x12f   :  { %v2008_v49 = vmax.f32 %v2006_v35, %v2007_v25  ;;  %v2021_v52 = vrot.slane %v2020_v45, 2  ;;  %v2921_v54 = vmax.f32 %v1861_v46, %v1862_v56  ;;  %v1183_v41 = vpop.trf.xlu0  ;;  %v2126_v23 = vsel %vm908_vm3, %v2890_v42, %v2899_v30 }
 0x130   :  { %v2923_v57 = vmax.f32 %v2001_v58, %v2002_v59  ;;  %v2145_v29 = vsel %vm904_vm1, %v1989_v43, %v1982_v15  ;;  %v2015_v40 = vmax.f32 %v2013_v24, %v2014_v11  ;;  %v1451_v50 = vcombine.high %v1183_v41, %v1183_v41 }
 0x131   :  { %v1458_v63 = vrot.slane %v1183_v41, %v2552_v5  ;;  %v2009_v0 = vrot.slane %v2008_v49, 1  ;;  %v2022_v1 = vmax.f32 %v2020_v45, %v2021_v52  ;;  %v2127_v46 = vsel %vm910_vm4, %v2901_v17, %v2126_v23 }
 0x132   :  { %v2016_v2 = vrot.slane %v2015_v40, 1  ;;  %v2028_v3 = vrot.slane %v2919_v53, 2  ;;  %v2934_v47 = vsel %vm906_vm2, %v1996_v44, %v2145_v29  ;;  %v1465_v4 = vrot.slane %v1451_v50, %v2552_v5 }
 0x133   :  { %v1466_v7 = vcombine.high %v1458_v63, %v1458_v63  ;;  %v1920_v8 = vsel %vm1583_vm8, %v1458_v63, -inf  ;;  %v2938_v42 = vmax.f32 %v2008_v49, %v2009_v0  ;;  %v1184_v9 = vpop.trf.xlu0  ;;  %v2128_v10 = vsel %vm912_vm5, %v1849_v48, %v2127_v46 }
 0x134   :  { %v1921_v30 = vrot.slane %v1920_v8, 4  ;;  %v2941_v12 = vmax.f32 %v2015_v40, %v2016_v2  ;;  %v2023_v14 = vrot.slane %v2022_v1, 1  ;;  %v1467_v17 = vcombine.high %v1465_v4, %v1465_v4 }
 0x135   :  { %v1927_v18 = vsel %vm1583_vm8, %v1466_v7, -inf  ;;  %v1934_v60 = vsel %vm1583_vm8, %v1465_v4, -inf  ;;  %v1468_v55 = vcombine.high %v1184_v9, %v1184_v9  ;;  %v1475_v6 = vrot.slane %v1184_v9, %v2552_v5 }
 0x136   :  { %v1922_v20 = vmax.f32 %v1920_v8, %v1921_v30  ;;  %v1928_v21 = vrot.slane %v1927_v18, 4  ;;  %v1935_v56 = vrot.slane %v1934_v60, 4  ;;  %v1941_v22 = vsel %vm1583_vm8, %v1467_v17, -inf }
 0x137   :  { %v1482_v26 = vrot.slane %v1468_v55, %v2552_v5  ;;  %v2129_v48 = vsel %vm914_vm6, %v2907_v62, %v2128_v10  ;;  %v2024_v27 = vmax.f32 %v2022_v1, %v2023_v14  ;;  %v1942_v31 = vrot.slane %v1941_v22, 4 }
 0x138   :  { %v1923_v28 = vrot.slane %v1922_v20, 2  ;;  %v1929_v61 = vmax.f32 %v1927_v18, %v1928_v21  ;;  %v1936_v51 = vmax.f32 %v1934_v60, %v1935_v56  ;;  %v1483_v32 = vcombine.high %v1475_v6, %v1475_v6 }
 0x139   :  { %v1484_v33 = vcombine.high %v1482_v26, %v1482_v26  ;;  %v1948_v13 = vsel %vm1583_vm8, %v1475_v6, -inf  ;;  %v1962_v16 = vsel %vm1583_vm8, %v1482_v26, -inf  ;;  %v1943_v37 = vmax.f32 %v1941_v22, %v1942_v31 }
 0x13a   :  { %v1924_v34 = vmax.f32 %v1922_v20, %v1923_v28  ;;  %v1930_v35 = vrot.slane %v1929_v61, 2  ;;  %v1937_v36 = vrot.slane %v1936_v51, 2  ;;  %v1949_v38 = vrot.slane %v1948_v13, 4 }
 0x13b   :  { %v1955_v5 = vsel %vm1583_vm8, %v1483_v32, -inf  ;;  %v1963_v39 = vrot.slane %v1962_v16, 4  ;;  %v1969_v62 = vsel %vm1583_vm8, %v1484_v33, -inf  ;;  %v1944_v25 = vrot.slane %v1943_v37, 2 }
 0x13c   :  { %v1925_v58 = vrot.slane %v1924_v34, 1  ;;  %v1931_v24 = vmax.f32 %v1929_v61, %v1930_v35  ;;  %v1938_v15 = vmax.f32 %v1936_v51, %v1937_v36  ;;  %v1950_v45 = vmax.f32 %v1948_v13, %v1949_v38 }
 0x13d   :  { %v1956_v19 = vrot.slane %v1955_v5, 4  ;;  %v1964_v43 = vmax.f32 %v1962_v16, %v1963_v39  ;;  %v1970_v44 = vrot.slane %v1969_v62, 4  ;;  %v1945_v52 = vmax.f32 %v1943_v37, %v1944_v25 }
 0x13e   :  { %v1926_v59 = vmax.f32 %v1924_v34, %v1925_v58  ;;  %v1932_v11 = vrot.slane %v1931_v24, 1  ;;  %v1939_v49 = vrot.slane %v1938_v15, 1  ;;  %v1951_v29 = vrot.slane %v1950_v45, 2 }
 0x13f   :  { %v1957_v41 = vmax.f32 %v1955_v5, %v1956_v19  ;;  %v1965_v40 = vrot.slane %v1964_v43, 2  ;;  %v1971_v23 = vmax.f32 %v1969_v62, %v1970_v44  ;;  %v1946_v0 = vrot.slane %v1945_v52, 1 }
 0x140   :  { %v1933_v50 = vmax.f32 %v1931_v24, %v1932_v11  ;;  %v1940_v63 = vmax.f32 %v1938_v15, %v1939_v49  ;;  %v2130_v1 = vsel %vm916_vm7, %v2921_v54, %v2129_v48  ;;  %v1952_v2 = vmax.f32 %v1950_v45, %v1951_v29 }
 0x141   :  { %v1958_v46 = vrot.slane %v1957_v41, 2  ;;  %v1966_v4 = vmax.f32 %v1964_v43, %v1965_v40  ;;  %2288 = vxpose.xlu0.b32.start.end [1/1] (short) (narrow) %v2130_v1, 8  ;;  %v2029_v7 = vmax.f32 %v2919_v53, %v2028_v3  ;;  %v1947_v8 = vmax.f32 %v1945_v52, %v1946_v0 }
 0x142   :  { %v2138_v30 = vsel %vm904_vm1, %v1933_v50, %v1926_v59  ;;  %v2147_v9 = vsel %vm908_vm3, %v2923_v57, %v2934_v47  ;;  %v1972_v10 = vrot.slane %v1971_v23, 2  ;;  %v1953_v14 = vrot.slane %v1952_v2, 1 }
 0x143   :  { %v1959_v17 = vmax.f32 %v1957_v41, %v1958_v46  ;;  %v2030_v18 = vrot.slane %v2029_v7, 1  ;;  %v2148_v54 = vsel %vm910_vm4, %v2938_v42, %v2147_v9  ;;  %v1967_v55 = vrot.slane %v1966_v4, 1 }
 0x144   :  { %v2149_v60 = vsel %vm912_vm5, %v2941_v12, %v2148_v54  ;;  %v1973_v20 = vmax.f32 %v1971_v23, %v1972_v10  ;;  %v2139_v53 = vsel %vm906_vm2, %v1940_v63, %v2138_v30  ;;  %v1954_v3 = vmax.f32 %v1952_v2, %v1953_v14 }
 0x145   :  { %v1960_v21 = vrot.slane %v1959_v17, 1  ;;  %v2031_v56 = vmax.f32 %v2029_v7, %v2030_v18  ;;  %v2150_v6 = vsel %vm914_vm6, %v2024_v27, %v2149_v60  ;;  %v1968_v57 = vmax.f32 %v1966_v4, %v1967_v55 }
 0x146   :  { %v1974_v47 = vrot.slane %v1973_v20, 1  ;;  %v2140_v22 = vsel %vm908_vm3, %v1947_v8, %v2139_v53  ;;  %v2525_v27 = vmov 0.0  }
 0x147   :  { %v2151_v26 = vsel %vm916_vm7, %v2031_v56, %v2150_v6  ;;  %v1961_v48 = vmax.f32 %v1959_v17, %v1960_v21  ;;  %v2141_v42 = vsel %vm910_vm4, %v1954_v3, %v2140_v22  ;;  %2426 = vst.msk [vmem:[#allocation5 + $0x20] sm:$0xff] %vm2416_vm9, %v2525_v27  ;;  %2427 = vst.msk [vmem:[#allocation5 + $0x28] sm:$0xff] %vm2416_vm9, %v2525_v27 }
 0x148   :  { %2384 = vxpose.xlu1.b32.start.end [1/1] (short) (narrow) %v2151_v26, 8  ;;  %v1975_v12 = vmax.f32 %v1973_v20, %v1974_v47  ;;  %2428 = vst.msk [vmem:[#allocation5 + $0x30] sm:$0xff] %vm2416_vm9, %v2525_v27  ;;  %2429 = vst.msk [vmem:[#allocation5 + $0x38] sm:$0xff] %vm2416_vm9, %v2525_v27 }
 0x149   :  { %v2142_v28 = vsel %vm912_vm5, %v1961_v48, %v2141_v42  ;;  %2430 = vst.msk [vmem:[#allocation5 + $0x60] sm:$0xff] %vm2416_vm9, %v2525_v27  ;;  %2431 = vst.msk [vmem:[#allocation5 + $0x68] sm:$0xff] %vm2416_vm9, %v2525_v27 }
 0x14a   :  { %v2143_v61 = vsel %vm914_vm6, %v1968_v57, %v2142_v28  ;;  %2432 = vst.msk [vmem:[#allocation5 + $0x70] sm:$0xff] %vm2416_vm9, %v2525_v27  ;;  %2433 = vst.msk [vmem:[#allocation5 + $0x78] sm:$0xff] %vm2416_vm9, %v2525_v27 }
 0x14b   :  { %v2144_v51 = vsel %vm916_vm7, %v1975_v12, %v2143_v61 }
 0x14c   :  { %2352 = vxpose.xlu0.b32.start.end [1/1] (short) (narrow) %v2144_v51, 8 }
 0x169   :  { %v2176_v31 = vpop.trf.xlu0 }
 0x16a   :  { %2417 = vst.msk [vmem:[#allocation5] sm:$0xff] %vm2416_vm9, %v2176_v31 }
 0x16f   :  { %v2240_v32 = vpop.trf.xlu0 }
 0x170   :  { %2419 = vst.msk [vmem:[#allocation5 + $0x10] sm:$0xff] %vm2416_vm9, %v2240_v32 }
 0x18d   :  { %v2208_v33 = vpop.trf.xlu1 }
 0x18e   :  { %2418 = vst.msk [vmem:[#allocation5 + $0x8] sm:$0xff] %vm2416_vm9, %v2208_v33 }
 0x191   :  { %v2272_v13 = vpop.trf.xlu1 }
 0x192   :  { %2420 = vst.msk [vmem:[#allocation5 + $0x18] sm:$0xff] %vm2416_vm9, %v2272_v13 }
 0x1a6   :  { %v2336_v16 = vpop.trf.xlu1 }
 0x1a7   :  { %2422 = vst.msk [vmem:[#allocation5 + $0x48] sm:$0xff] %vm2416_vm9, %v2336_v16 }
 0x1c1   :  { %v2304_v34 = vpop.trf.xlu0 }
 0x1c2   :  { %2421 = vst.msk [vmem:[#allocation5 + $0x40] sm:$0xff] %vm2416_vm9, %v2304_v34 }
 0x1c8   :  { %v2400_v35 = vpop.trf.xlu1 }
 0x1c9   :  { %2424 = vst.msk [vmem:[#allocation5 + $0x58] sm:$0xff] %vm2416_vm9, %v2400_v35 }
 0x1cc   :  { %v2368_v36 = vpop.trf.xlu0 }
 0x1cd   :  { %2423 = vst.msk [vmem:[#allocation5 + $0x50] sm:$0xff] %vm2416_vm9, %v2368_v36 }
 0x1ce   :  { %2506 = shalt.err (!%p2503_p12)
}
 0x1cf   :  { %s2507_s24 = scalar_lea.hbm %s3007_s1, 2048 }
 0x1d0   :  { %p2508_p13 = scmp.ne.s32.totalorder %s3007_s1, %s2507_s24  ;;  %p2511_p0 = scmp.lt.u32.totalorder %s2507_s24, %s3007_s1 }
 0x1d2   :  { %p2513_p1 = pnand %p2511_p0, %p2508_p13 }
 0x1d4   :  { %2516 = shalt.err (!%p2513_p1)
}
 0x1d5   :  { %2445 = dma.vmem_to_hbm [thread:$0]  %s2440_s20, 2048, %s3007_s1, [#allocation4], %s2522_s16, %s2522_s16, %s2523_s17  }
 0x1d6   :  { %2519 = dma.done.wait [#allocation4], 2048  }
 0x1d7   :  { %2520 = vsyncadd [#allocation4], 4294965248 }
 0x1d8   :  { %2449 = vsyncpa [#allocation3], 1 }
 0x1d9   :  { %2450 = vsyncpa [#allocation4], 1 }

</bundles_post_ra>
